<compile_context>
chip_gen: v7x
topology: tpu7x:2x2x1
jax: 0.10.0
libtpu: 0.0.40
codegen_flags: <defaults>
</compile_context>

<pallas_src>
import functools

import jax
import jax.numpy as jnp
from jax.experimental import pallas as pl
from jax.experimental.pallas import tpu as pltpu

LN_EPS = 1e-5  # nn.LayerNorm default


# ----------------------------------------------------------------------------
# Small helpers
# ----------------------------------------------------------------------------
def _round_up(a, m):
    return ((a + m - 1) // m) * m


def _vmem_capacity_bytes():
    try:
        return int(pltpu.get_tpu_info().vmem_capacity_bytes)
    except Exception:
        return 64 * 2**20  # conservative fallback (v7x per-TC VMEM)


def _blk_bytes(shape, itemsize):
    dims = list(shape)
    dims[-1] = _round_up(dims[-1], 128)
    if len(dims) >= 2:
        dims[-2] = _round_up(dims[-2], 8)
    n = 1
    for d in dims:
        n *= d
    return n * itemsize


def _vmem_limit(block_bytes_list, scratch_bytes=0):
    est = 2 * sum(block_bytes_list) + scratch_bytes  # 2x: Pallas double-buffers blocks
    cap = int(0.75 * _vmem_capacity_bytes())         # generation-aware headroom
    return int(min(cap, max(16 * 2**20, int(1.25 * est))))


def _choose_bc(B, Tp, Hp):
    """Pick the sub-batch fold so M = bc*Tp fills the MXU without blowing VMEM."""
    cap = _vmem_capacity_bytes()
    bc = max(1, min(B, -(-1024 // Tp)))     # target M ~ 1024 rows
    bc = min(bc, 16)                        # bound in-kernel cumsum unroll
    while bc > 1 and 10 * bc * Tp * Hp * 4 > cap // 3:
        bc -= 1                             # activation + live intermediates budget
    # keep >= 2 parallel grid points for megacore (v7x) when it doesn't starve M
    if bc > 1 and (B + bc - 1) // bc < 2 and (bc // 2) * Tp >= 512:
        bc = bc // 2
    return bc


def _layernorm(v, g, b):
    mu = jnp.mean(v, axis=-1, keepdims=True)
    var = jnp.mean((v - mu) ** 2, axis=-1, keepdims=True)
    return (v - mu) * jax.lax.rsqrt(var + LN_EPS) * g + b


def _masked_layernorm(v, g, b, h_real):
    """LayerNorm over the real H columns of an H-padded activation.

    Padded input columns are zero and padded gamma/beta are zero, so the
    output's padded columns stay exactly zero (required by the next layer).
    """
    hp = v.shape[-1]
    inv_h = 1.0 / float(h_real)
    mu = jnp.sum(v, axis=-1, keepdims=True) * inv_h
    d = v - mu
    if hp != h_real:
        col = jax.lax.broadcasted_iota(jnp.int32,
                                       (1,) * (v.ndim - 1) + (hp,), v.ndim - 1)
        d = jnp.where(col < h_real, d, 0.0)
    var = jnp.sum(d * d, axis=-1, keepdims=True) * inv_h
    return d * jax.lax.rsqrt(var + LN_EPS) * g + b


# ----------------------------------------------------------------------------
# Fused layer stack.  Per-layer weight slots (only the 6 linears the PyTorch
# forward actually uses):
#   w_ref[0] dec_siamese       w_ref[1] dec_global_layer
#   w_ref[2] enc_gate_global   w_ref[3] enc_global_layer
#   w_ref[4] enc_gate_siamese
#   wg_ref   = concat([dec_gate_siamese ; enc_gate_global]) (K-concat gate fusion)
# ----------------------------------------------------------------------------
def gated_dss_stack_kernel(x0_ref, L_ref, norm_ref, emean_ref,
                           w_ref, b_ref, wg_ref, bg_ref, lng_ref, lnb_ref,
                           out_ref, x_scr, *, h_real):
    layer = pl.program_id(1)
    n_layers = pl.num_programs(1)
    bc, t_pad, h_pad = x_scr.shape
    m = bc * t_pad

    @pl.when(layer == 0)
    def _():
        x_scr[...] = x0_ref[...]           # load fresh activation for this sub-batch

    xb = x_scr[...]                        # (Bc, Tp, Hp) bf16, resident across layers
    x2 = xb.reshape(m, h_pad)              # fold batch into the matmul M dim

    def lin(vb, i):                        # bf16 x bf16 -> f32 accumulation on the MXU
        return jnp.dot(vb, w_ref[i], preferred_element_type=jnp.float32) + b_ref[i]

    # --- decoder-side DSS ---
    _trg = lin(x2, 0)                                                   # dec_siamese (M, Hp)

    # causal cumsum via the precomputed lower-triangular operator L
    # TODO(synk): chunked scan instead of the dense (T,T) matmul for very long T.
    rows = []
    for i in range(bc):
        cum_i = jnp.dot(L_ref[...], xb[i], preferred_element_type=jnp.float32)  # (Tp, Hp)
        rows.append(cum_i * norm_ref[i])          # * trg_mask / cumsum(trg_mask) (precomputed)
    dec_in = rows[0] if bc == 1 else jnp.concatenate(rows, axis=0)      # (M, Hp) f32
    dec_glob = lin(dec_in.astype(jnp.bfloat16), 1)                      # dec_global_layer

    # fused dec-gate: sigmoid(dec_gate_siamese(_trg) + enc_gate_global(dec_glob))
    gate_in = jnp.concatenate([_trg.astype(jnp.bfloat16),
                               dec_glob.astype(jnp.bfloat16)], axis=-1)  # (M, 2Hp)
    dec_gate = jax.nn.sigmoid(jnp.dot(gate_in, wg_ref[...],
                                      preferred_element_type=jnp.float32)
                              + bg_ref[...])
    t = dec_glob + dec_gate * (_trg - dec_glob)                         # lerp form of the mix
    t = t + jnp.maximum(t, 0.0)                                         # + relu (dropout = id, eval)
    t = _masked_layernorm(t, lng_ref[0], lnb_ref[0], h_real)            # dec_layer_norm

    # --- encoder-side DSS (masked encoder mean precomputed in the wrapper) ---
    emean = emean_ref[...].reshape(bc, h_pad).astype(jnp.bfloat16)
    enc_glob = (jnp.dot(emean, w_ref[3], preferred_element_type=jnp.float32)
                + b_ref[3])                                             # enc_global_layer (Bc, Hp)
    g1 = lin(t.astype(jnp.bfloat16), 4)                                 # enc_gate_siamese (M, Hp)
    g2 = (jnp.dot(enc_glob.astype(jnp.bfloat16), w_ref[2],
                  preferred_element_type=jnp.float32) + b_ref[2])       # enc_gate_global (Bc, Hp)
    enc_gate = jax.nn.sigmoid(g1.reshape(bc, t_pad, h_pad) + g2.reshape(bc, 1, h_pad))
    trg3 = _trg.reshape(bc, t_pad, h_pad)
    eg3 = enc_glob.reshape(bc, 1, h_pad)
    # NOTE: uses _trg (dec_siamese output) in the mix, exactly as the PyTorch forward does.
    t2 = eg3 + enc_gate * (trg3 - eg3)
    t2 = t2 + jnp.maximum(t2, 0.0)
    out = _masked_layernorm(t2, lng_ref[1], lnb_ref[1], h_real)         # enc_layer_norm (Bc,Tp,Hp)

    @pl.when(layer < n_layers - 1)
    def _():
        x_scr[...] = out.astype(x_scr.dtype)       # carry to the next layer (bf16)

    @pl.when(layer == n_layers - 1)
    def _():
        out_ref[...] = out.astype(out_ref.dtype)   # only the final layer touches HBM


def run_layer_stack(x0, L, norm, emean, W5, B5, Wg, bg, lng, lnb, *, bc, h_real):
    Bp, Tp, Hp = x0.shape
    NL = W5.shape[0]
    M = bc * Tp

    blocks = [
        _blk_bytes((bc, Tp, Hp), 2),       # x0 (bf16)
        _blk_bytes((Tp, Tp), 2),           # L (bf16, grid-invariant)
        _blk_bytes((bc, Tp, 1), 4),        # mask / cumsum(mask)
        _blk_bytes((bc, 1, Hp), 4),        # masked encoder mean
        _blk_bytes((5, Hp, Hp), 2),        # per-layer weights (bf16)
        _blk_bytes((5, 1, Hp), 4),         # biases
        _blk_bytes((2 * Hp, Hp), 2),       # fused dec-gate weight (bf16)
        _blk_bytes((1, Hp), 4),            # fused dec-gate bias
        _blk_bytes((2, 1, Hp), 4),         # LN gammas
        _blk_bytes((2, 1, Hp), 4),         # LN betas
        _blk_bytes((bc, Tp, Hp), 2),       # output (bf16)
    ]
    scratch_bytes = _blk_bytes((bc, Tp, Hp), 2) + 10 * _blk_bytes((M, Hp), 4)
    vmem_limit = _vmem_limit(blocks, scratch_bytes=scratch_bytes)

    steps = (Bp // bc) * NL
    flops = int(steps * (10 * M * Hp * Hp + 2 * bc * Tp * Tp * Hp
                         + 4 * bc * Hp * Hp + 25 * M * Hp))
    transc = int(steps * (2 * M * Hp + 2 * M))
    bytes_acc = int(2 * Bp * Tp * Hp * 2 + Tp * Tp * 2 + Bp * (Tp + Hp) * 4
                    + steps * (7 * Hp * Hp * 2 + 10 * Hp * 4))

    kernel = functools.partial(gated_dss_stack_kernel, h_real=h_real)

    return pl.pallas_call(
        kernel,
        out_shape=jax.ShapeDtypeStruct((Bp, Tp, Hp), jnp.bfloat16),
        grid=(Bp // bc, NL),
        in_specs=[
            pl.BlockSpec((bc, Tp, Hp), lambda b, l: (b, 0, 0)),          # x0 (embedded trg)
            pl.BlockSpec((Tp, Tp), lambda b, l: (0, 0)),                 # L (grid-invariant)
            pl.BlockSpec((bc, Tp, 1), lambda b, l: (b, 0, 0)),           # mask / cumsum(mask)
            pl.BlockSpec((bc, 1, Hp), lambda b, l: (b, 0, 0)),           # masked encoder mean
            pl.BlockSpec((None, 5, Hp, Hp), lambda b, l: (l, 0, 0, 0)),  # per-layer weights
            pl.BlockSpec((None, 5, 1, Hp), lambda b, l: (l, 0, 0, 0)),   # per-layer biases
            pl.BlockSpec((None, 2 * Hp, Hp), lambda b, l: (l, 0, 0)),    # fused gate weight
            pl.BlockSpec((None, 1, Hp), lambda b, l: (l, 0, 0)),         # fused gate bias
            pl.BlockSpec((None, 2, 1, Hp), lambda b, l: (l, 0, 0, 0)),   # LN gammas
            pl.BlockSpec((None, 2, 1, Hp), lambda b, l: (l, 0, 0, 0)),   # LN betas
        ],
        out_specs=pl.BlockSpec((bc, Tp, Hp), lambda b, l: (b, 0, 0)),
        scratch_shapes=[pltpu.VMEM((bc, Tp, Hp), jnp.bfloat16)],
        compiler_params=pltpu.CompilerParams(
            dimension_semantics=("parallel", "arbitrary"),
            vmem_limit_bytes=vmem_limit),
        cost_estimate=pl.CostEstimate(flops=flops, transcendentals=transc,
                                      bytes_accessed=bytes_acc),
    )(x0, L, norm, emean, W5, B5, Wg, bg, lng, lnb)


# ----------------------------------------------------------------------------
# fc_out: bf16 activation straight from the stack; vocab is the OUTER grid dim
# so the (Hp, tv) weight tile stays VMEM-resident across the inner M loop.
# ----------------------------------------------------------------------------
def fc_out_kernel(x_ref, w_ref, b_ref, out_ref):
    out_ref[...] = (jnp.dot(x_ref[...], w_ref[...],
                            preferred_element_type=jnp.float32)
                    + b_ref[...]).astype(out_ref.dtype)


def run_fc_out(x2d, W, b, *, tile_m=512, tile_v=2048):
    M, Hp = x2d.shape
    Vp = W.shape[1]
    tm_ = min(M, tile_m)
    tv_ = min(Vp, tile_v)
    grid = (pl.cdiv(Vp, tv_), pl.cdiv(M, tm_))   # vocab outer -> weight tile resident

    blocks = [_blk_bytes((tm_, Hp), 2), _blk_bytes((Hp, tv_), 2),
              _blk_bytes((1, tv_), 4), _blk_bytes((tm_, tv_), 4)]
    vmem_limit = _vmem_limit(blocks)

    return pl.pallas_call(
        fc_out_kernel,
        out_shape=jax.ShapeDtypeStruct((M, Vp), jnp.float32),
        grid=grid,
        in_specs=[
            pl.BlockSpec((tm_, Hp), lambda j, i: (i, 0)),
            pl.BlockSpec((Hp, tv_), lambda j, i: (0, j)),
            pl.BlockSpec((1, tv_), lambda j, i: (0, j)),
        ],
        out_specs=pl.BlockSpec((tm_, tv_), lambda j, i: (i, j)),
        compiler_params=pltpu.CompilerParams(
            dimension_semantics=("parallel", "parallel"),
            vmem_limit_bytes=vmem_limit),
        cost_estimate=pl.CostEstimate(
            flops=int(2 * M * Hp * Vp), transcendentals=0,
            bytes_accessed=int(pl.cdiv(Vp, tv_) * M * Hp * 2
                               + Hp * Vp * 2 + Vp * 4 + M * Vp * 4)),
    )(x2d, W, b)


# ----------------------------------------------------------------------------
# Parameter packing (pad H -> Hp, pre-concat the fused gate weight).
# ----------------------------------------------------------------------------
def _pack_layer_params(params, Hp):
    W = params["W"].astype(jnp.float32)    # (NL, 6, H, H) PyTorch layer order
    Bi = params["B"].astype(jnp.float32)   # (NL, 6, 1, H)
    H = W.shape[-1]
    dp = Hp - H

    def pad_w(w):
        return jnp.pad(w, [(0, 0)] * (w.ndim - 2) + [(0, dp), (0, dp)])

    def pad_b(b):
        return jnp.pad(b, [(0, 0)] * (b.ndim - 1) + [(0, dp)])

    # forward uses: 0 dec_siamese, 1 dec_global_layer, 2 dec_gate_siamese,
    #               3 enc_gate_global (BOTH gates), 4 enc_global_layer, 5 enc_gate_siamese
    sel = (0, 1, 3, 4, 5)
    W5 = pad_w(jnp.stack([W[:, i] for i in sel], axis=1)).astype(jnp.bfloat16)
    B5 = pad_b(jnp.stack([Bi[:, i] for i in sel], axis=1))
    Wg = jnp.concatenate([pad_w(W[:, 2]), pad_w(W[:, 3])], axis=1).astype(jnp.bfloat16)
    bg = pad_b(Bi[:, 2] + Bi[:, 3])
    lng = pad_b(params["ln_g"].astype(jnp.float32))
    lnb = pad_b(params["ln_b"].astype(jnp.float32))
    return W5, B5, Wg, bg, lng, lnb


# ----------------------------------------------------------------------------
# Full decoder.  Embedding gather + mask precomputation are JAX glue; the
# layer stack and fc_out are Pallas kernels.
# ----------------------------------------------------------------------------
def gated_dss_decoder(trg_tokens, enc_src, trg_mask, src_mask, params):
    B, T = trg_tokens.shape
    S = enc_src.shape[1]
    H = params["tok_emb"].shape[1]
    V = params["fc_w"].shape[1]

    Hp = _round_up(H, 128)     # lane-dense activations / weights
    Tp = _round_up(T, 16)      # clean bf16 sublane layout for the carried activation
    Vp = _round_up(V, 128)     # lane-dense fc_out stores
    bc = _choose_bc(B, Tp, Hp)
    Bp = _round_up(B, bc)

    scale = jnp.sqrt(jnp.float32(H))
    # TODO(synk): embedding gather stays in JAX glue (no dedicated Pallas gather kernel).
    x0 = params["tok_emb"][trg_tokens] * scale + params["pos_emb"][:T][None]
    x0 = jnp.pad(x0, ((0, Bp - B), (0, Tp - T), (0, Hp - H))).astype(jnp.bfloat16)

    # Loop-invariant mask math, hoisted out of the kernel (0/0 degeneracies guarded).
    tm = trg_mask.reshape(B, T).astype(jnp.float32)
    norm = tm / jnp.maximum(jnp.cumsum(tm, axis=1), 1.0)
    norm = jnp.pad(norm, ((0, Bp - B), (0, Tp - T)))[:, :, None]          # (Bp, Tp, 1)

    sm = src_mask.reshape(B, S).astype(jnp.float32)[:, :, None]
    emean = (jnp.sum(enc_src * sm, axis=1, keepdims=True)
             / jnp.maximum(jnp.sum(sm, axis=1, keepdims=True), 1.0))      # (B, 1, H)
    emean = jnp.pad(emean, ((0, Bp - B), (0, 0), (0, Hp - H)))

    L = jnp.tril(jnp.ones((Tp, Tp), jnp.float32)).astype(jnp.bfloat16)    # cumsum operator

    W5, B5, Wg, bg, lng, lnb = _pack_layer_params(params, Hp)
    y = run_layer_stack(x0, L, norm, emean, W5, B5, Wg, bg, lng, lnb,
                        bc=bc, h_real=H)                                  # (Bp, Tp, Hp) bf16

    fc_w = jnp.pad(params["fc_w"], ((0, Hp - H), (0, Vp - V))).astype(jnp.bfloat16)
    fc_b = jnp.pad(params["fc_b"], ((0, 0), (0, Vp - V)))
    logits = run_fc_out(y.reshape(Bp * Tp, Hp), fc_w, fc_b)               # (Bp*Tp, Vp) f32
    return logits.reshape(Bp, Tp, Vp)[:B, :T, :V]


# ----------------------------------------------------------------------------
# Pure-JAX reference (mirrors the kernel's bf16-at-matmul-boundary casts).
# ----------------------------------------------------------------------------
def reference_decoder(trg_tokens, enc_src, trg_mask, src_mask, params):
    B, T = trg_tokens.shape
    S = enc_src.shape[1]
    H = params["tok_emb"].shape[1]
    NL = params["W"].shape[0]
    scale = jnp.sqrt(jnp.float32(H))
    x = params["tok_emb"][trg_tokens] * scale + params["pos_emb"][:T][None]

    tm = trg_mask.reshape(B, T).astype(jnp.float32)
    norm = (tm / jnp.maximum(jnp.cumsum(tm, axis=1), 1.0))[:, :, None]
    sm = src_mask.reshape(B, S).astype(jnp.float32)[:, :, None]
    enc_mean = (jnp.sum(enc_src * sm, axis=1, keepdims=True)
                / jnp.maximum(jnp.sum(sm, axis=1, keepdims=True), 1.0))

    def lin(v, W, b):
        return jnp.dot(v.astype(jnp.bfloat16), W.astype(jnp.bfloat16),
                       preferred_element_type=jnp.float32) + b

    for l in range(NL):
        W = params["W"][l]
        Bi = params["B"][l]
        g = params["ln_g"][l]
        bt = params["ln_b"][l]
        xb32 = x.astype(jnp.bfloat16).astype(jnp.float32)
        _trg = lin(x, W[0], Bi[0])
        dec_global = jnp.cumsum(xb32, axis=1) * norm
        dec_global = lin(dec_global, W[1], Bi[1])
        dec_gate = jax.nn.sigmoid(lin(_trg, W[2], Bi[2]) + lin(dec_global, W[3], Bi[3]))
        t = _trg * dec_gate + dec_global * (1.0 - dec_gate)
        t = _layernorm(t + jax.nn.relu(t), g[0], bt[0])
        enc_global = lin(enc_mean, W[4], Bi[4])
        enc_gate = jax.nn.sigmoid(lin(t, W[5], Bi[5]) + lin(enc_global, W[3], Bi[3]))
        t2 = _trg * enc_gate + enc_global * (1.0 - enc_gate)
        x = _layernorm(t2 + jax.nn.relu(t2), g[1], bt[1])

    return (jnp.dot(x.astype(jnp.bfloat16), params["fc_w"].astype(jnp.bfloat16),
                    preferred_element_type=jnp.float32) + params["fc_b"])


def init_params(key, vocab, hid, n_layers, max_len=100):
    ks = jax.random.split(key, 6)
    inv = 1.0 / jnp.sqrt(jnp.float32(hid))
    return dict(
        tok_emb=jax.random.normal(ks[0], (vocab, hid), jnp.float32) * 0.02,
        pos_emb=jax.random.normal(ks[1], (max_len, hid), jnp.float32) * 0.02,
        fc_w=jax.random.normal(ks[2], (hid, vocab), jnp.float32) * inv,
        fc_b=jax.random.normal(ks[3], (1, vocab), jnp.float32) * 0.01,
        W=jax.random.normal(ks[4], (n_layers, 6, hid, hid), jnp.float32) * inv,
        B=jax.random.normal(ks[5], (n_layers, 6, 1, hid), jnp.float32) * 0.01,
        ln_g=jnp.ones((n_layers, 2, 1, hid), jnp.float32),
        ln_b=jnp.zeros((n_layers, 2, 1, hid), jnp.float32),
    )


if __name__ == "__main__":
    B, T, S, H, V, N_LAYERS = 2, 8, 8, 32, 50, 2

    key = jax.random.PRNGKey(0)
    k_par, k_tok, k_enc = jax.random.split(key, 3)

    params = init_params(k_par, V, H, N_LAYERS)

    trg_tokens = jax.random.randint(k_tok, (B, T), 0, V)
    enc_src = jax.random.normal(k_enc, (B, S, H), jnp.float32)

    # padding masks as [B,1,1,L] like PyTorch
    trg_mask = jnp.ones((B, 1, 1, T), jnp.float32).at[0, 0, 0, T - 1:].set(0.0)
    src_mask = jnp.ones((B, 1, 1, S), jnp.float32).at[1, 0, 0, S - 2:].set(0.0)

    out = gated_dss_decoder(trg_tokens, enc_src, trg_mask, src_mask, params)
    out = jax.block_until_ready(out)

    ref = reference_decoder(trg_tokens, enc_src, trg_mask, src_mask, params)
    ref = jax.block_until_ready(ref)

    assert out.shape == (B, T, V), out.shape
    err = float(jnp.max(jnp.abs(out - ref)))
    assert jnp.allclose(out, ref, rtol=5e-3, atol=5e-3), err
    print("KERNEL_OK")
</pallas_src>

<mosaic_0001>
module attributes {stable_mosaic.version = 11 : i64} {
  func.func @gated_dss_stack_kernel(%arg0: i32, %arg1: i32, %arg2: memref<2x16x128xbf16, #tpu.memory_space<vmem>>, %arg3: memref<16x16xbf16, #tpu.memory_space<vmem>>, %arg4: memref<2x16x1xf32, #tpu.memory_space<vmem>>, %arg5: memref<2x1x128xf32, #tpu.memory_space<vmem>>, %arg6: memref<1x5x128x128xbf16, #tpu.memory_space<vmem>>, %arg7: memref<1x5x1x128xf32, #tpu.memory_space<vmem>>, %arg8: memref<1x256x128xbf16, #tpu.memory_space<vmem>>, %arg9: memref<1x1x128xf32, #tpu.memory_space<vmem>>, %arg10: memref<1x2x1x128xf32, #tpu.memory_space<vmem>>, %arg11: memref<1x2x1x128xf32, #tpu.memory_space<vmem>>, %arg12: memref<2x16x128xbf16, #tpu.memory_space<vmem>>, %arg13: memref<2x16x128xbf16, #tpu.memory_space<vmem>>) attributes {dimension_semantics = [#tpu.dimension_semantics<parallel>, #tpu.dimension_semantics<arbitrary>], iteration_bounds = array<i64: 1, 2>, scalar_prefetch = 0 : i64, scratch_operands = 1 : i64, tpu.core_type = #tpu.core_type<tc>, window_params = [{transform_indices = @transform_0, window_bounds = array<i64: 2, 16, 128>}, {pipeline_mode = #tpu.pipeline_mode<synchronous>, transform_indices = @transform_1, window_bounds = array<i64: 16, 16>}, {transform_indices = @transform_2, window_bounds = array<i64: 2, 16, 1>}, {transform_indices = @transform_3, window_bounds = array<i64: 2, 1, 128>}, {transform_indices = @transform_4, window_bounds = array<i64: 1, 5, 128, 128>}, {transform_indices = @transform_5, window_bounds = array<i64: 1, 5, 1, 128>}, {transform_indices = @transform_6, window_bounds = array<i64: 1, 256, 128>}, {transform_indices = @transform_7, window_bounds = array<i64: 1, 1, 128>}, {transform_indices = @transform_8, window_bounds = array<i64: 1, 2, 1, 128>}, {transform_indices = @transform_9, window_bounds = array<i64: 1, 2, 1, 128>}, {transform_indices = @transform_10, window_bounds = array<i64: 2, 16, 128>}]} {
    %c0_i32 = arith.constant 0 : i32
    %0 = arith.cmpi eq, %arg1, %c0_i32 : i32
    %1 = arith.extui %0 : i1 to i32
    %c0_i32_0 = arith.constant 0 : i32
    %2 = arith.cmpi ne, %1, %c0_i32_0 : i32
    scf.if %2 {
      %c0_101 = arith.constant 0 : index
      %c0_102 = arith.constant 0 : index
      %c0_103 = arith.constant 0 : index
      %173 = vector.load %arg2[%c0_101, %c0_102, %c0_103] : memref<2x16x128xbf16, #tpu.memory_space<vmem>>, vector<2x16x128xbf16>
      %c0_104 = arith.constant 0 : index
      %c0_105 = arith.constant 0 : index
      %c0_106 = arith.constant 0 : index
      %174 = vector.load %arg13[%c0_104, %c0_105, %c0_106] : memref<2x16x128xbf16, #tpu.memory_space<vmem>>, vector<2x16x128xbf16>
      tpu.vector_store %arg13[%c0_104, %c0_105, %c0_106], %173 {strides = array<i32>} : memref<2x16x128xbf16, #tpu.memory_space<vmem>>, vector<2x16x128xbf16>,
    } else {
    }
    %c0 = arith.constant 0 : index
    %c0_1 = arith.constant 0 : index
    %c0_2 = arith.constant 0 : index
    %3 = vector.load %arg13[%c0, %c0_1, %c0_2] : memref<2x16x128xbf16, #tpu.memory_space<vmem>>, vector<2x16x128xbf16>
    %4 = vector.shape_cast %3 : vector<2x16x128xbf16> to vector<32x128xbf16>
    %c0_3 = arith.constant 0 : index
    %c0_4 = arith.constant 0 : index
    %c0_5 = arith.constant 0 : index
    %c0_6 = arith.constant 0 : index
    %5 = vector.load %arg6[%c0_3, %c0_4, %c0_5, %c0_6] : memref<1x5x128x128xbf16, #tpu.memory_space<vmem>>, vector<1x1x128x128xbf16>
    %6 = vector.shape_cast %5 : vector<1x1x128x128xbf16> to vector<128x128xbf16>
    %cst = arith.constant dense<0.000000e+00> : vector<32x128xf32>
    %7 = tpu.matmul %4, %6, %cst {dimension_numbers = #tpu.dot_dimension_numbers<[1], [0], [0], [1], [0, 0, 1, 1], [], []>} : vector<32x128xbf16>, vector<128x128xbf16>, vector<32x128xf32> -> vector<32x128xf32>
    %c0_7 = arith.constant 0 : index
    %c0_8 = arith.constant 0 : index
    %c0_9 = arith.constant 0 : index
    %c0_10 = arith.constant 0 : index
    %8 = vector.load %arg7[%c0_7, %c0_8, %c0_9, %c0_10] : memref<1x5x1x128xf32, #tpu.memory_space<vmem>>, vector<1x1x1x128xf32>
    %9 = vector.shape_cast %8 : vector<1x1x1x128xf32> to vector<1x128xf32>
    %10 = vector.broadcast %9 : vector<1x128xf32> to vector<32x128xf32>
    %11 = arith.addf %7, %10 : vector<32x128xf32>
    %c0_11 = arith.constant 0 : index
    %c0_12 = arith.constant 0 : index
    %12 = vector.load %arg3[%c0_11, %c0_12] : memref<16x16xbf16, #tpu.memory_space<vmem>>, vector<16x16xbf16>
    %13 = vector.extract_strided_slice %3 {offsets = [0, 0, 0], sizes = [1, 16, 128], strides = [1, 1, 1]} : vector<2x16x128xbf16> to vector<1x16x128xbf16>
    %14 = vector.shape_cast %13 : vector<1x16x128xbf16> to vector<16x128xbf16>
    %cst_13 = arith.constant dense<0.000000e+00> : vector<16x128xf32>
    %15 = tpu.matmul %12, %14, %cst_13 {dimension_numbers = #tpu.dot_dimension_numbers<[1], [0], [0], [1], [0, 0, 1, 1], [], []>} : vector<16x16xbf16>, vector<16x128xbf16>, vector<16x128xf32> -> vector<16x128xf32>
    %c0_14 = arith.constant 0 : index
    %c0_15 = arith.constant 0 : index
    %c0_16 = arith.constant 0 : index
    %16 = vector.load %arg4[%c0_14, %c0_15, %c0_16] : memref<2x16x1xf32, #tpu.memory_space<vmem>>, vector<1x16x1xf32>
    %17 = vector.shape_cast %16 : vector<1x16x1xf32> to vector<16x1xf32>
    %18 = vector.broadcast %17 : vector<16x1xf32> to vector<16x128xf32>
    %19 = arith.mulf %15, %18 : vector<16x128xf32>
    %c0_17 = arith.constant 0 : index
    %c0_18 = arith.constant 0 : index
    %20 = vector.load %arg3[%c0_17, %c0_18] : memref<16x16xbf16, #tpu.memory_space<vmem>>, vector<16x16xbf16>
    %21 = vector.extract_strided_slice %3 {offsets = [1, 0, 0], sizes = [1, 16, 128], strides = [1, 1, 1]} : vector<2x16x128xbf16> to vector<1x16x128xbf16>
    %22 = vector.shape_cast %21 : vector<1x16x128xbf16> to vector<16x128xbf16>
    %cst_19 = arith.constant dense<0.000000e+00> : vector<16x128xf32>
    %23 = tpu.matmul %20, %22, %cst_19 {dimension_numbers = #tpu.dot_dimension_numbers<[1], [0], [0], [1], [0, 0, 1, 1], [], []>} : vector<16x16xbf16>, vector<16x128xbf16>, vector<16x128xf32> -> vector<16x128xf32>
    %c1 = arith.constant 1 : index
    %c0_20 = arith.constant 0 : index
    %c0_21 = arith.constant 0 : index
    %24 = vector.load %arg4[%c1, %c0_20, %c0_21] : memref<2x16x1xf32, #tpu.memory_space<vmem>>, vector<1x16x1xf32>
    %25 = vector.shape_cast %24 : vector<1x16x1xf32> to vector<16x1xf32>
    %26 = vector.broadcast %25 : vector<16x1xf32> to vector<16x128xf32>
    %27 = arith.mulf %23, %26 : vector<16x128xf32>
    %28 = tpu.concatenate %19, %27 in 0 : vector<16x128xf32>, vector<16x128xf32> -> vector<32x128xf32>
    %29 = arith.truncf %28 : vector<32x128xf32> to vector<32x128xbf16>
    %c0_22 = arith.constant 0 : index
    %c1_23 = arith.constant 1 : index
    %c0_24 = arith.constant 0 : index
    %c0_25 = arith.constant 0 : index
    %30 = vector.load %arg6[%c0_22, %c1_23, %c0_24, %c0_25] : memref<1x5x128x128xbf16, #tpu.memory_space<vmem>>, vector<1x1x128x128xbf16>
    %31 = vector.shape_cast %30 : vector<1x1x128x128xbf16> to vector<128x128xbf16>
    %cst_26 = arith.constant dense<0.000000e+00> : vector<32x128xf32>
    %32 = tpu.matmul %29, %31, %cst_26 {dimension_numbers = #tpu.dot_dimension_numbers<[1], [0], [0], [1], [0, 0, 1, 1], [], []>} : vector<32x128xbf16>, vector<128x128xbf16>, vector<32x128xf32> -> vector<32x128xf32>
    %c0_27 = arith.constant 0 : index
    %c1_28 = arith.constant 1 : index
    %c0_29 = arith.constant 0 : index
    %c0_30 = arith.constant 0 : index
    %33 = vector.load %arg7[%c0_27, %c1_28, %c0_29, %c0_30] : memref<1x5x1x128xf32, #tpu.memory_space<vmem>>, vector<1x1x1x128xf32>
    %34 = vector.shape_cast %33 : vector<1x1x1x128xf32> to vector<1x128xf32>
    %35 = vector.broadcast %34 : vector<1x128xf32> to vector<32x128xf32>
    %36 = arith.addf %32, %35 : vector<32x128xf32>
    %37 = arith.truncf %11 : vector<32x128xf32> to vector<32x128xbf16>
    %38 = arith.truncf %36 : vector<32x128xf32> to vector<32x128xbf16>
    %39 = tpu.concatenate %37, %38 in 1 : vector<32x128xbf16>, vector<32x128xbf16> -> vector<32x256xbf16>
    %c0_31 = arith.constant 0 : index
    %c0_32 = arith.constant 0 : index
    %c0_33 = arith.constant 0 : index
    %40 = vector.load %arg8[%c0_31, %c0_32, %c0_33] : memref<1x256x128xbf16, #tpu.memory_space<vmem>>, vector<1x256x128xbf16>
    %41 = vector.shape_cast %40 : vector<1x256x128xbf16> to vector<256x128xbf16>
    %cst_34 = arith.constant dense<0.000000e+00> : vector<32x128xf32>
    %42 = tpu.matmul %39, %41, %cst_34 {dimension_numbers = #tpu.dot_dimension_numbers<[1], [0], [0], [1], [0, 0, 1, 1], [], []>} : vector<32x256xbf16>, vector<256x128xbf16>, vector<32x128xf32> -> vector<32x128xf32>
    %c0_35 = arith.constant 0 : index
    %c0_36 = arith.constant 0 : index
    %c0_37 = arith.constant 0 : index
    %43 = vector.load %arg9[%c0_35, %c0_36, %c0_37] : memref<1x1x128xf32, #tpu.memory_space<vmem>>, vector<1x1x128xf32>
    %44 = vector.shape_cast %43 : vector<1x1x128xf32> to vector<1x128xf32>
    %45 = vector.broadcast %44 : vector<1x128xf32> to vector<32x128xf32>
    %46 = arith.addf %42, %45 : vector<32x128xf32>
    %47 = arith.negf %46 : vector<32x128xf32>
    %48 = math.exp %47 : vector<32x128xf32>
    %cst_38 = arith.constant 1.000000e+00 : f32
    %49 = vector.broadcast %cst_38 : f32 to vector<32x128xf32>
    %50 = arith.addf %49, %48 : vector<32x128xf32>
    %51 = arith.divf %49, %50 : vector<32x128xf32>
    %52 = arith.subf %11, %36 : vector<32x128xf32>
    %53 = arith.mulf %51, %52 : vector<32x128xf32>
    %54 = arith.addf %36, %53 : vector<32x128xf32>
    %cst_39 = arith.constant 0.000000e+00 : f32
    %55 = vector.broadcast %cst_39 : f32 to vector<32x128xf32>
    %56 = arith.maximumf %54, %55 : vector<32x128xf32>
    %57 = arith.addf %54, %56 : vector<32x128xf32>
    %c0_40 = arith.constant 0 : index
    %c0_41 = arith.constant 0 : index
    %c0_42 = arith.constant 0 : index
    %c0_43 = arith.constant 0 : index
    %58 = vector.load %arg10[%c0_40, %c0_41, %c0_42, %c0_43] : memref<1x2x1x128xf32, #tpu.memory_space<vmem>>, vector<1x1x1x128xf32>
    %59 = vector.shape_cast %58 : vector<1x1x1x128xf32> to vector<1x128xf32>
    %c0_44 = arith.constant 0 : index
    %c0_45 = arith.constant 0 : index
    %c0_46 = arith.constant 0 : index
    %c0_47 = arith.constant 0 : index
    %60 = vector.load %arg11[%c0_44, %c0_45, %c0_46, %c0_47] : memref<1x2x1x128xf32, #tpu.memory_space<vmem>>, vector<1x1x1x128xf32>
    %61 = vector.shape_cast %60 : vector<1x1x1x128xf32> to vector<1x128xf32>
    %cst_48 = arith.constant dense<0.000000e+00> : vector<32xf32>
    %62 = vector.multi_reduction <add>, %57, %cst_48 [1] : vector<32x128xf32> to vector<32xf32>
    %63 = vector.shape_cast %62 : vector<32xf32> to vector<32x1xf32>
    %cst_49 = arith.constant 3.125000e-02 : f32
    %64 = vector.broadcast %cst_49 : f32 to vector<32x1xf32>
    %65 = arith.mulf %63, %64 : vector<32x1xf32>
    %66 = vector.broadcast %65 : vector<32x1xf32> to vector<32x128xf32>
    %67 = arith.subf %57, %66 : vector<32x128xf32>
    %68 = tpu.iota {dimensions = array<i32: 1>} : vector<1x128xi32>
    %c32_i32 = arith.constant 32 : i32
    %69 = vector.broadcast %c32_i32 : i32 to vector<1x128xi32>
    %70 = arith.cmpi slt, %68, %69 : vector<1x128xi32>
    %cst_50 = arith.constant 0.000000e+00 : f32
    %71 = vector.shape_cast %70 : vector<1x128xi1> to vector<1x128xi1>
    %72 = vector.broadcast %71 : vector<1x128xi1> to vector<32x128xi1>
    %73 = vector.broadcast %cst_50 : f32 to vector<32x128xf32>
    %74 = arith.select %72, %67, %73 : vector<32x128xi1>, vector<32x128xf32>
    %75 = arith.mulf %74, %74 : vector<32x128xf32>
    %cst_51 = arith.constant dense<0.000000e+00> : vector<32xf32>
    %76 = vector.multi_reduction <add>, %75, %cst_51 [1] : vector<32x128xf32> to vector<32xf32>
    %77 = vector.shape_cast %76 : vector<32xf32> to vector<32x1xf32>
    %cst_52 = arith.constant 3.125000e-02 : f32
    %78 = vector.broadcast %cst_52 : f32 to vector<32x1xf32>
    %79 = arith.mulf %77, %78 : vector<32x1xf32>
    %cst_53 = arith.constant 9.99999974E-6 : f32
    %80 = vector.broadcast %cst_53 : f32 to vector<32x1xf32>
    %81 = arith.addf %79, %80 : vector<32x1xf32>
    %82 = math.rsqrt %81 : vector<32x1xf32>
    %83 = vector.broadcast %82 : vector<32x1xf32> to vector<32x128xf32>
    %84 = arith.mulf %74, %83 : vector<32x128xf32>
    %85 = vector.broadcast %59 : vector<1x128xf32> to vector<32x128xf32>
    %86 = arith.mulf %84, %85 : vector<32x128xf32>
    %87 = vector.broadcast %61 : vector<1x128xf32> to vector<32x128xf32>
    %88 = arith.addf %86, %87 : vector<32x128xf32>
    %c0_54 = arith.constant 0 : index
    %c0_55 = arith.constant 0 : index
    %c0_56 = arith.constant 0 : index
    %89 = vector.load %arg5[%c0_54, %c0_55, %c0_56] : memref<2x1x128xf32, #tpu.memory_space<vmem>>, vector<2x1x128xf32>
    %90 = vector.shape_cast %89 : vector<2x1x128xf32> to vector<2x128xf32>
    %91 = arith.truncf %90 : vector<2x128xf32> to vector<2x128xbf16>
    %c0_57 = arith.constant 0 : index
    %c3 = arith.constant 3 : index
    %c0_58 = arith.constant 0 : index
    %c0_59 = arith.constant 0 : index
    %92 = vector.load %arg6[%c0_57, %c3, %c0_58, %c0_59] : memref<1x5x128x128xbf16, #tpu.memory_space<vmem>>, vector<1x1x128x128xbf16>
    %93 = vector.shape_cast %92 : vector<1x1x128x128xbf16> to vector<128x128xbf16>
    %cst_60 = arith.constant dense<0.000000e+00> : vector<2x128xf32>
    %94 = tpu.matmul %91, %93, %cst_60 {dimension_numbers = #tpu.dot_dimension_numbers<[1], [0], [0], [1], [0, 0, 1, 1], [], []>} : vector<2x128xbf16>, vector<128x128xbf16>, vector<2x128xf32> -> vector<2x128xf32>
    %c0_61 = arith.constant 0 : index
    %c3_62 = arith.constant 3 : index
    %c0_63 = arith.constant 0 : index
    %c0_64 = arith.constant 0 : index
    %95 = vector.load %arg7[%c0_61, %c3_62, %c0_63, %c0_64] : memref<1x5x1x128xf32, #tpu.memory_space<vmem>>, vector<1x1x1x128xf32>
    %96 = vector.shape_cast %95 : vector<1x1x1x128xf32> to vector<1x128xf32>
    %97 = vector.broadcast %96 : vector<1x128xf32> to vector<2x128xf32>
    %98 = arith.addf %94, %97 : vector<2x128xf32>
    %99 = arith.truncf %88 : vector<32x128xf32> to vector<32x128xbf16>
    %c0_65 = arith.constant 0 : index
    %c4 = arith.constant 4 : index
    %c0_66 = arith.constant 0 : index
    %c0_67 = arith.constant 0 : index
    %100 = vector.load %arg6[%c0_65, %c4, %c0_66, %c0_67] : memref<1x5x128x128xbf16, #tpu.memory_space<vmem>>, vector<1x1x128x128xbf16>
    %101 = vector.shape_cast %100 : vector<1x1x128x128xbf16> to vector<128x128xbf16>
    %cst_68 = arith.constant dense<0.000000e+00> : vector<32x128xf32>
    %102 = tpu.matmul %99, %101, %cst_68 {dimension_numbers = #tpu.dot_dimension_numbers<[1], [0], [0], [1], [0, 0, 1, 1], [], []>} : vector<32x128xbf16>, vector<128x128xbf16>, vector<32x128xf32> -> vector<32x128xf32>
    %c0_69 = arith.constant 0 : index
    %c4_70 = arith.constant 4 : index
    %c0_71 = arith.constant 0 : index
    %c0_72 = arith.constant 0 : index
    %103 = vector.load %arg7[%c0_69, %c4_70, %c0_71, %c0_72] : memref<1x5x1x128xf32, #tpu.memory_space<vmem>>, vector<1x1x1x128xf32>
    %104 = vector.shape_cast %103 : vector<1x1x1x128xf32> to vector<1x128xf32>
    %105 = vector.broadcast %104 : vector<1x128xf32> to vector<32x128xf32>
    %106 = arith.addf %102, %105 : vector<32x128xf32>
    %107 = arith.truncf %98 : vector<2x128xf32> to vector<2x128xbf16>
    %c0_73 = arith.constant 0 : index
    %c2 = arith.constant 2 : index
    %c0_74 = arith.constant 0 : index
    %c0_75 = arith.constant 0 : index
    %108 = vector.load %arg6[%c0_73, %c2, %c0_74, %c0_75] : memref<1x5x128x128xbf16, #tpu.memory_space<vmem>>, vector<1x1x128x128xbf16>
    %109 = vector.shape_cast %108 : vector<1x1x128x128xbf16> to vector<128x128xbf16>
    %cst_76 = arith.constant dense<0.000000e+00> : vector<2x128xf32>
    %110 = tpu.matmul %107, %109, %cst_76 {dimension_numbers = #tpu.dot_dimension_numbers<[1], [0], [0], [1], [0, 0, 1, 1], [], []>} : vector<2x128xbf16>, vector<128x128xbf16>, vector<2x128xf32> -> vector<2x128xf32>
    %c0_77 = arith.constant 0 : index
    %c2_78 = arith.constant 2 : index
    %c0_79 = arith.constant 0 : index
    %c0_80 = arith.constant 0 : index
    %111 = vector.load %arg7[%c0_77, %c2_78, %c0_79, %c0_80] : memref<1x5x1x128xf32, #tpu.memory_space<vmem>>, vector<1x1x1x128xf32>
    %112 = vector.shape_cast %111 : vector<1x1x1x128xf32> to vector<1x128xf32>
    %113 = vector.broadcast %112 : vector<1x128xf32> to vector<2x128xf32>
    %114 = arith.addf %110, %113 : vector<2x128xf32>
    %115 = vector.shape_cast %106 : vector<32x128xf32> to vector<2x16x128xf32>
    %116 = vector.shape_cast %114 : vector<2x128xf32> to vector<2x1x128xf32>
    %117 = vector.broadcast %116 : vector<2x1x128xf32> to vector<2x16x128xf32>
    %118 = arith.addf %115, %117 : vector<2x16x128xf32>
    %119 = arith.negf %118 : vector<2x16x128xf32>
    %120 = math.exp %119 : vector<2x16x128xf32>
    %cst_81 = arith.constant 1.000000e+00 : f32
    %121 = vector.broadcast %cst_81 : f32 to vector<2x16x128xf32>
    %122 = arith.addf %121, %120 : vector<2x16x128xf32>
    %123 = arith.divf %121, %122 : vector<2x16x128xf32>
    %124 = vector.shape_cast %11 : vector<32x128xf32> to vector<2x16x128xf32>
    %125 = vector.shape_cast %98 : vector<2x128xf32> to vector<2x1x128xf32>
    %126 = vector.broadcast %125 : vector<2x1x128xf32> to vector<2x16x128xf32>
    %127 = arith.subf %124, %126 : vector<2x16x128xf32>
    %128 = arith.mulf %123, %127 : vector<2x16x128xf32>
    %129 = vector.broadcast %125 : vector<2x1x128xf32> to vector<2x16x128xf32>
    %130 = arith.addf %129, %128 : vector<2x16x128xf32>
    %cst_82 = arith.constant 0.000000e+00 : f32
    %131 = vector.broadcast %cst_82 : f32 to vector<2x16x128xf32>
    %132 = arith.maximumf %130, %131 : vector<2x16x128xf32>
    %133 = arith.addf %130, %132 : vector<2x16x128xf32>
    %c0_83 = arith.constant 0 : index
    %c1_84 = arith.constant 1 : index
    %c0_85 = arith.constant 0 : index
    %c0_86 = arith.constant 0 : index
    %134 = vector.load %arg10[%c0_83, %c1_84, %c0_85, %c0_86] : memref<1x2x1x128xf32, #tpu.memory_space<vmem>>, vector<1x1x1x128xf32>
    %135 = vector.shape_cast %134 : vector<1x1x1x128xf32> to vector<1x128xf32>
    %c0_87 = arith.constant 0 : index
    %c1_88 = arith.constant 1 : index
    %c0_89 = arith.constant 0 : index
    %c0_90 = arith.constant 0 : index
    %136 = vector.load %arg11[%c0_87, %c1_88, %c0_89, %c0_90] : memref<1x2x1x128xf32, #tpu.memory_space<vmem>>, vector<1x1x1x128xf32>
    %137 = vector.shape_cast %136 : vector<1x1x1x128xf32> to vector<1x128xf32>
    %cst_91 = arith.constant dense<0.000000e+00> : vector<2x16xf32>
    %138 = vector.multi_reduction <add>, %133, %cst_91 [2] : vector<2x16x128xf32> to vector<2x16xf32>
    %139 = vector.shape_cast %138 : vector<2x16xf32> to vector<2x16x1xf32>
    %cst_92 = arith.constant 3.125000e-02 : f32
    %140 = vector.broadcast %cst_92 : f32 to vector<2x16x1xf32>
    %141 = arith.mulf %139, %140 : vector<2x16x1xf32>
    %142 = vector.broadcast %141 : vector<2x16x1xf32> to vector<2x16x128xf32>
    %143 = arith.subf %133, %142 : vector<2x16x128xf32>
    %144 = tpu.iota {dimensions = array<i32: 2>} : vector<1x1x128xi32>
    %c32_i32_93 = arith.constant 32 : i32
    %145 = vector.broadcast %c32_i32_93 : i32 to vector<1x1x128xi32>
    %146 = arith.cmpi slt, %144, %145 : vector<1x1x128xi32>
    %cst_94 = arith.constant 0.000000e+00 : f32
    %147 = vector.shape_cast %146 : vector<1x1x128xi1> to vector<1x1x128xi1>
    %148 = vector.broadcast %147 : vector<1x1x128xi1> to vector<2x16x128xi1>
    %149 = vector.broadcast %cst_94 : f32 to vector<2x16x128xf32>
    %150 = arith.select %148, %143, %149 : vector<2x16x128xi1>, vector<2x16x128xf32>
    %151 = arith.mulf %150, %150 : vector<2x16x128xf32>
    %cst_95 = arith.constant dense<0.000000e+00> : vector<2x16xf32>
    %152 = vector.multi_reduction <add>, %151, %cst_95 [2] : vector<2x16x128xf32> to vector<2x16xf32>
    %153 = vector.shape_cast %152 : vector<2x16xf32> to vector<2x16x1xf32>
    %cst_96 = arith.constant 3.125000e-02 : f32
    %154 = vector.broadcast %cst_96 : f32 to vector<2x16x1xf32>
    %155 = arith.mulf %153, %154 : vector<2x16x1xf32>
    %cst_97 = arith.constant 9.99999974E-6 : f32
    %156 = vector.broadcast %cst_97 : f32 to vector<2x16x1xf32>
    %157 = arith.addf %155, %156 : vector<2x16x1xf32>
    %158 = math.rsqrt %157 : vector<2x16x1xf32>
    %159 = vector.broadcast %158 : vector<2x16x1xf32> to vector<2x16x128xf32>
    %160 = arith.mulf %150, %159 : vector<2x16x128xf32>
    %161 = vector.shape_cast %135 : vector<1x128xf32> to vector<1x1x128xf32>
    %162 = vector.broadcast %161 : vector<1x1x128xf32> to vector<2x16x128xf32>
    %163 = arith.mulf %160, %162 : vector<2x16x128xf32>
    %164 = vector.shape_cast %137 : vector<1x128xf32> to vector<1x1x128xf32>
    %165 = vector.broadcast %164 : vector<1x1x128xf32> to vector<2x16x128xf32>
    %166 = arith.addf %163, %165 : vector<2x16x128xf32>
    %c1_i32 = arith.constant 1 : i32
    %167 = arith.cmpi slt, %arg1, %c1_i32 : i32
    %168 = arith.extui %167 : i1 to i32
    %c0_i32_98 = arith.constant 0 : i32
    %169 = arith.cmpi ne, %168, %c0_i32_98 : i32
    scf.if %169 {
      %173 = arith.truncf %166 : vector<2x16x128xf32> to vector<2x16x128xbf16>
      %c0_101 = arith.constant 0 : index
      %c0_102 = arith.constant 0 : index
      %c0_103 = arith.constant 0 : index
      %174 = vector.load %arg13[%c0_101, %c0_102, %c0_103] : memref<2x16x128xbf16, #tpu.memory_space<vmem>>, vector<2x16x128xbf16>
      tpu.vector_store %arg13[%c0_101, %c0_102, %c0_103], %173 {strides = array<i32>} : memref<2x16x128xbf16, #tpu.memory_space<vmem>>, vector<2x16x128xbf16>,
    } else {
    }
    %c1_i32_99 = arith.constant 1 : i32
    %170 = arith.cmpi eq, %arg1, %c1_i32_99 : i32
    %171 = arith.extui %170 : i1 to i32
    %c0_i32_100 = arith.constant 0 : i32
    %172 = arith.cmpi ne, %171, %c0_i32_100 : i32
    scf.if %172 {
      %173 = arith.truncf %166 : vector<2x16x128xf32> to vector<2x16x128xbf16>
      %c0_101 = arith.constant 0 : index
      %c0_102 = arith.constant 0 : index
      %c0_103 = arith.constant 0 : index
      %174 = vector.load %arg12[%c0_101, %c0_102, %c0_103] : memref<2x16x128xbf16, #tpu.memory_space<vmem>>, vector<2x16x128xbf16>
      tpu.vector_store %arg12[%c0_101, %c0_102, %c0_103], %173 {strides = array<i32>} : memref<2x16x128xbf16, #tpu.memory_space<vmem>>, vector<2x16x128xbf16>,
    } else {
    }
    return
  }
  func.func @transform_0(%arg0: i32, %arg1: i32) -> (i32, i32, i32) {
    %c0_i32 = arith.constant 0 : i32
    %c0_i32_0 = arith.constant 0 : i32
    %c0_i32_1 = arith.constant 0 : i32
    return %arg0, %c0_i32, %c0_i32_0 : i32, i32, i32
  }
  func.func @transform_1(%arg0: i32, %arg1: i32) -> (i32, i32) {
    %c0_i32 = arith.constant 0 : i32
    %c0_i32_0 = arith.constant 0 : i32
    %c0_i32_1 = arith.constant 0 : i32
    return %c0_i32, %c0_i32_0 : i32, i32
  }
  func.func @transform_2(%arg0: i32, %arg1: i32) -> (i32, i32, i32) {
    %c0_i32 = arith.constant 0 : i32
    %c0_i32_0 = arith.constant 0 : i32
    %c0_i32_1 = arith.constant 0 : i32
    return %arg0, %c0_i32, %c0_i32_0 : i32, i32, i32
  }
  func.func @transform_3(%arg0: i32, %arg1: i32) -> (i32, i32, i32) {
    %c0_i32 = arith.constant 0 : i32
    %c0_i32_0 = arith.constant 0 : i32
    %c0_i32_1 = arith.constant 0 : i32
    return %arg0, %c0_i32, %c0_i32_0 : i32, i32, i32
  }
  func.func @transform_4(%arg0: i32, %arg1: i32) -> (i32, i32, i32, i32) {
    %c0_i32 = arith.constant 0 : i32
    %c0_i32_0 = arith.constant 0 : i32
    %c0_i32_1 = arith.constant 0 : i32
    %c0_i32_2 = arith.constant 0 : i32
    return %arg1, %c0_i32, %c0_i32_0, %c0_i32_1 : i32, i32, i32, i32
  }
  func.func @transform_5(%arg0: i32, %arg1: i32) -> (i32, i32, i32, i32) {
    %c0_i32 = arith.constant 0 : i32
    %c0_i32_0 = arith.constant 0 : i32
    %c0_i32_1 = arith.constant 0 : i32
    %c0_i32_2 = arith.constant 0 : i32
    return %arg1, %c0_i32, %c0_i32_0, %c0_i32_1 : i32, i32, i32, i32
  }
  func.func @transform_6(%arg0: i32, %arg1: i32) -> (i32, i32, i32) {
    %c0_i32 = arith.constant 0 : i32
    %c0_i32_0 = arith.constant 0 : i32
    %c0_i32_1 = arith.constant 0 : i32
    return %arg1, %c0_i32, %c0_i32_0 : i32, i32, i32
  }
  func.func @transform_7(%arg0: i32, %arg1: i32) -> (i32, i32, i32) {
    %c0_i32 = arith.constant 0 : i32
    %c0_i32_0 = arith.constant 0 : i32
    %c0_i32_1 = arith.constant 0 : i32
    return %arg1, %c0_i32, %c0_i32_0 : i32, i32, i32
  }
  func.func @transform_8(%arg0: i32, %arg1: i32) -> (i32, i32, i32, i32) {
    %c0_i32 = arith.constant 0 : i32
    %c0_i32_0 = arith.constant 0 : i32
    %c0_i32_1 = arith.constant 0 : i32
    %c0_i32_2 = arith.constant 0 : i32
    return %arg1, %c0_i32, %c0_i32_0, %c0_i32_1 : i32, i32, i32, i32
  }
  func.func @transform_9(%arg0: i32, %arg1: i32) -> (i32, i32, i32, i32) {
    %c0_i32 = arith.constant 0 : i32
    %c0_i32_0 = arith.constant 0 : i32
    %c0_i32_1 = arith.constant 0 : i32
    %c0_i32_2 = arith.constant 0 : i32
    return %arg1, %c0_i32, %c0_i32_0, %c0_i32_1 : i32, i32, i32, i32
  }
  func.func @transform_10(%arg0: i32, %arg1: i32) -> (i32, i32, i32) {
    %c0_i32 = arith.constant 0 : i32
    %c0_i32_0 = arith.constant 0 : i32
    %c0_i32_1 = arith.constant 0 : i32
    return %arg0, %c0_i32, %c0_i32_0 : i32, i32, i32
  }
}

</mosaic_0001>

<bundles_post_ra>
// kernel: tpu_custom_call.1
= control target key start
LH: loop header
LB: loop body
LE: loop exit
PB: predicated region body
PF: predicated region fallthrough
CT: control target
= control target key end

     0   :  { %s3248_s0 = inlined_call_operand.vmem [shape: bf16[2,16,128], index: 0, kind: input, shape index: {}]   ;;  %s3249_s1 = inlined_call_operand.vmem [shape: bf16[16,16], index: 1, kind: input, shape index: {}]   ;;  %s3250_s2 = inlined_call_operand.vmem [shape: f32[2,16,1], index: 2, kind: input, shape index: {}]   ;;  %s3251_s3 = inlined_call_operand.vmem [shape: f32[2,1,128], index: 3, kind: input, shape index: {}]   ;;  %s3252_s4 = inlined_call_operand.hbm [shape: bf16[2,5,128,128], index: 4, kind: input, shape index: {}]   ;;  %s3253_s5 = inlined_call_operand.vmem [shape: f32[2,5,1,128], index: 5, kind: input, shape index: {}]   ;;  %s3254_s6 = inlined_call_operand.hbm [shape: bf16[2,256,128], index: 6, kind: input, shape index: {}]   ;;  %s3255_s7 = inlined_call_operand.vmem [shape: f32[2,1,128], index: 7, kind: input, shape index: {}]   ;;  %s3256_s8 = inlined_call_operand.vmem [shape: f32[2,2,1,128], index: 8, kind: input, shape index: {}]   ;;  %s3257_s9 = inlined_call_operand.vmem [shape: f32[2,2,1,128], index: 9, kind: input, shape index: {}]   ;;  %s3258_s10 = inlined_call_operand.hbm [shape: bf16[2,16,128], index: 10, kind: output, shape index: {}]  }
   0x1   :  { %3262 = sst [smem:[#allocation14_spill]] %s3252_s4 }
   0x2   :  { %3263 = sst [smem:[#allocation15_spill]] %s3254_s6 }
   0x3   :  { %15 = vsyncpa [#allocation4], 0 }
   0x4   :  { %17 = vsyncpa [#allocation4 + $0x1], 0 }
   0x5   :  { %18 = vsyncpa [#allocation7], 0 }
   0x6   :  { %20 = vsyncpa [#allocation7 + $0x1], 0 }
   0x7   :  { %21 = vsyncpa [#allocation5], 0  ;;  %s2806_s13 = smov 0   ;;  %s2808_s14 = smov 0  }
   0x8   :  { %s2810_s15 = smov 0   ;;  %s2812_s16 = smov 0  }
   0x9   :  { %s2814_s17 = smov 0   ;;  %s2816_s18 = smov 0  }
   0xa LB: > { %s3259_s19 = sadd.s32 4294967295, %s2738_s18   ;;  %s36_s20 = sadd.s32 1, %s2734_s17  ;;  %s2738_s18 = sphi %s2816_s18, %s27_s18   ;;  %s2734_s17 = sphi %s2814_s17, %s3280_s17   ;;  %s2730_s16 = sphi %s2812_s16, %s3279_s16   ;;  %s2726_s15 = sphi %s2810_s15, %s3278_s15   ;;  %s2722_s14 = sphi %s2808_s14, %s3277_s14   ;;  %s2718_s13 = sphi %s2806_s13, %s3276_s13  }
   0xb   : > { %p37_p0 = scmp.ge.s32.totalorder %s36_s20, 2  ;;  %s145_s21 = sadd.s32 1, %s2726_s15 }
   0xc   : > { %p152_p1 = scmp.ne.s32.totalorder %s2726_s15, %s2722_s14  ;;  %p153_p2 = scmp.eq.s32.totalorder %s2738_s18, 0 }
   0xd   : > { %s3282_s20 = smov (%p37_p0, %s36_s20), 0  ;;  %p158_p4 = scmp.ne.s32.totalorder %s2722_s14, %s2718_s13 }
   0xe   : > { %3264 = sst [smem:[#allocation12_spill]] %s3282_s20  ;;  %p154_p3 = por %p153_p2, %p152_p1 }
   0xf   : > { %s142_s22 = ssub.s32 %s2734_s17, %s3282_s20  ;;  %p159_p5 = scmp.eq.s32.totalorder %s3259_s19, 0 }
  0x10   : > { %p143_p6 = scmp.eq.s32.totalorder %s142_s22, 0  ;;  %p2425_p8 = scmp.lt.s32.totalorder %s2738_s18, 2 }
  0x11   : > { %p2847_p7 = por %p159_p5, %p158_p4  ;;  %s2856_s25 = sand.u32 1, %s2726_s15  }
  0x12   : > { %s2853_s24 = scalar_select %p143_p6, %s2726_s15, %s145_s21  }
  0x13   : > { %s3265_s23 = scalar_select %p2847_p7, 1, 0 }
  0x14   : > { %3266 = sst [smem:[#allocation13_spill]] %s2853_s24  ;;  %s2407_s26 = smul.u32 5120, %s2734_s17 }
  0x15   : > { %s2406_s27 = smul.u32 320, %s2856_s25  ;;  %s3267_s4 = sld [smem:[#allocation14_spill]] }
  0x16   : > { %p2865_p9 = pnand %p2425_p8, %p154_p3  ;;  %s370_s21 = scalar_lea.sflag [#allocation4], %s2856_s25 }
  0x17   : > { %s373_s12 = scalar_lea.vmem [#allocation3], %s2406_s27 }
  0x18   : > { %s380_s13 = sshll.u32 %s373_s12, 4  ;;  %p2596_p11 = pneg %p2865_p9  ;;  %s2869_s13 = int_to_ptr.vmem [resolvable:$true] %s380_s13 }
  0x1b   : > { %s2863_s30 = scalar_lea.hbm %s3267_s4, %s2407_s26  ;;  %s2599_s29 = scalar_lea.hbm %s3267_s4, 10240 }
  0x1c   : > { %s2594_s22 = scalar_lea.hbm %s2863_s30, 5120  ;;  %p2600_p0 = scmp.lt.u32.totalorder %s2863_s30, %s3267_s4 }
  0x1d   : > { %p2595_p10 = scmp.ne.s32.totalorder %s2863_s30, %s2594_s22  ;;  %p2601_p1 = scmp.lt.u32.totalorder %s2599_s29, %s2594_s22 }
  0x1e   : > { %p2603_p3 = scmp.lt.u32.totalorder %s2594_s22, %s2863_s30 }
  0x1f   : > { %p2597_p12 = pnand %p2596_p11, %p2595_p10  ;;  %p2602_p2 = por %p2601_p1, %p2600_p0 }
  0x21   : > { %p2598_p13 = pneg %p2597_p12  ;;  %p2604_p4 = por %p2603_p3, %p2602_p2 }
  0x23   : > { %p2605_p5 = pnand %p2604_p4, %p2598_p13 }
  0x25   : > { %2608 = shalt.err (!%p2605_p5)
}
  0x26   : > { %s2609_s27 = scalar_lea.vmem %s2869_s13, 5120  ;;  %s2740_s12 = smov [#allocation3]  }
  0x27   : > { %p2610_p6 = scmp.ne.s32.totalorder %s2869_s13, %s2609_s27  ;;  %s2614_s26 = sshll.u32 %s2740_s12, 4  ;;  %s2615_s26 = int_to_ptr.vmem [resolvable:$false] %s2614_s26 }
  0x28   : > { %s2616_s19 = scalar_lea.vmem %s2615_s26, 10240  ;;  %p2617_p12 = scmp.lt.s32.totalorder %s2869_s13, %s2615_s26 }
  0x29   : > { %p2612_p8 = pnand %p2610_p6, %p2596_p11  ;;  %p2618_p0 = scmp.lt.s32.totalorder %s2616_s19, %s2609_s27 }
  0x2b   : > { %p2613_p10 = pneg %p2612_p8  ;;  %p2619_p1 = por %p2618_p0, %p2617_p12 }
  0x2d   : > { %p2620_p2 = pnand %p2619_p1, %p2613_p10 }
  0x2f   : > { %2623 = shalt.err (!%p2620_p2)
}
  0x30   : > { %s2741_s20 = smov 64   ;;  %s2742_s22 = smov 4  }
  0x31   : > { %2421 = dma.hbm_to_vmem [thread:$0]  (!%p2865_p9), %s2863_s30, 5120, %s2869_s13, %s370_s21, %s2741_s20, %s2741_s20, %s2742_s22  }
  0x32   : > { %p2032_p13 = scmp.ge.s32.totalorder %s2738_s18, 1  ;;  %p436_p3 = scmp.lt.s32.totalorder %s2738_s18, 3 }
  0x33   : > { %s2029_s28 = sshll.u32 %s2856_s25, 7  ;;  %s2198_s27 = sshll.u32 %s2734_s17, 11 }
  0x34   : > { %p2905_p4 = pnand %p2032_p13, %p436_p3  ;;  %s401_s12 = scalar_lea.vmem [#allocation6], %s2029_s28 }
  0x35   : > { %s408_s26 = sshll.u32 %s401_s12, 4  ;;  %s3270_s6 = sld [smem:[#allocation15_spill]]  ;;  %s2915_s26 = int_to_ptr.vmem [resolvable:$true] %s408_s26 }
  0x36   : > { %s398_s30 = scalar_lea.sflag [#allocation7], %s2856_s25 }
  0x3b   : > { %s2913_s24 = scalar_lea.hbm %s3270_s6, %s2198_s27  ;;  %s2629_s12 = scalar_lea.hbm %s3270_s6, 4096 }
  0x3c   : > { %s2624_s13 = scalar_lea.hbm %s2913_s24, 2048  ;;  %p2630_p10 = scmp.lt.u32.totalorder %s2913_s24, %s3270_s6 }
  0x3d   : > { %p2625_p5 = scmp.ne.s32.totalorder %s2913_s24, %s2624_s13  ;;  %p2631_p12 = scmp.lt.u32.totalorder %s2629_s12, %s2624_s13 }
  0x3e   : > { %p2633_p1 = scmp.lt.u32.totalorder %s2624_s13, %s2913_s24 }
  0x3f   : > { %p2627_p6 = pnand %p2625_p5, %p2596_p11  ;;  %p2632_p0 = por %p2631_p12, %p2630_p10 }
  0x41   : > { %p2628_p8 = pneg %p2627_p6  ;;  %p2634_p2 = por %p2633_p1, %p2632_p0 }
  0x43   : > { %p2635_p13 = pnand %p2634_p2, %p2628_p8 }
  0x45   : > { %2638 = shalt.err (!%p2635_p13)
}
  0x46   : > { %s2639_s19 = scalar_lea.vmem %s2915_s26, 2048  ;;  %s2743_s21 = smov [#allocation6]  }
  0x47   : > { %p2640_p3 = scmp.ne.s32.totalorder %s2915_s26, %s2639_s19  ;;  %s2644_s28 = sshll.u32 %s2743_s21, 4  ;;  %s2645_s28 = int_to_ptr.vmem [resolvable:$false] %s2644_s28 }
  0x48   : > { %s2646_s4 = scalar_lea.vmem %s2645_s28, 4096  ;;  %p2647_p7 = scmp.lt.s32.totalorder %s2915_s26, %s2645_s28 }
  0x49   : > { %p2642_p5 = pnand %p2640_p3, %p2596_p11  ;;  %p2648_p10 = scmp.lt.s32.totalorder %s2646_s4, %s2639_s19 }
  0x4b   : > { %p2643_p6 = pneg %p2642_p5  ;;  %p2649_p12 = por %p2648_p10, %p2647_p7 }
  0x4d   : > { %p2650_p0 = pnand %p2649_p12, %p2643_p6 }
  0x4f   : > { %2653 = shalt.err (!%p2650_p0)
}
  0x50   : > { %2424 = dma.hbm_to_vmem [thread:$0]  (!%p2865_p9), %s2913_s24, 2048, %s2915_s26, %s398_s30, %s2741_s20, %s2741_s20, %s2742_s22  }
  0x51   : > { %440 = sbr.rel (%p2905_p4) target bundleno = 1766 (0x6e6), region = 60  ;;  %s442_s13 = sand.u32 (!%p2905_p4), 1, %s2722_s14  }
  0x52   : > { %s2408_s12 = smul.u32 (!%p2905_p4), 320, %s442_s13  ;;  %s443_s27 = scalar_lea.sflag (!%p2905_p4), [#allocation4], %s442_s13 }
  0x53   : > { %p3271_p7 = scmp.ne.s32.totalorder (!%p2905_p4), %s3265_s23, 0 }
  0x54   : > { %s2949_s19 = scalar_lea.vmem (!%p2905_p4), [#allocation3], %s2408_s12 }
  0x58   : > { %2705 = dma.done.wait (%p3271_p7), %s443_s27, 5120  }
  0x59   : > { %2707 = vsyncadd (%p3271_p7), %s443_s27, 4294962176  ;;  %s2033_s25 = sshll.u32 %s442_s13, 7  ;;  %s452_s11 = scalar_lea.sflag [#allocation7], %s442_s13 }
  0x5a   : > { %s2955_s21 = scalar_lea.vmem [#allocation6], %s2033_s25 }
  0x5b   : > { %2709 = dma.done.wait (%p3271_p7), %s452_s11, 2048  }
  0x5c   : > { %2711 = vsyncadd (%p3271_p7), %s452_s11, 4294965248  ;;  %p542_p9 = scmp.lt.s32.totalorder %s2730_s16, 1  ;;  %p2036_p11 = scmp.ne.s32.totalorder %s2730_s16, 0 }
  0x5d   : > { %v2485_v0 = vld [vmem:[%s3248_s0] sm:$0xff] (!%p2036_p11)   ;;  %v2486_v1 = vld [vmem:[%s3248_s0 + $0x8] sm:$0xff] (!%p2036_p11)  }
  0x5e   : > { %s2963_s24 = scalar_select %p542_p9, %s2730_s16, 1 }
  0x5f   : > { %562 = sbr.rel (%p2036_p11) target bundleno = 102 (0x66), region = 72  ;;  %579 = vst [vmem:[#allocation2] sm:$0xff] (!%p2036_p11), %v2485_v0  ;;  %580 = vst [vmem:[#allocation2 + $0x8] sm:$0xff] (!%p2036_p11), %v2486_v1 }
  0x60   : > { %s2409_s20 = smul.u32 5, %s2963_s24  ;;  %s548_s26 = scalar_lea.vmem %s3255_s7, %s2963_s24 }
  0x61   : > { %s2034_s30 = sshll.u32 %s2963_s24, 1 }
  0x62   : > { %s2974_s13 = scalar_lea.vmem %s3253_s5, %s2409_s20  ;;  %s2979_s27 = scalar_lea.vmem %s3256_s8, %s2034_s30 }
  0x63   : > { %s2984_s6 = scalar_lea.vmem %s3257_s9, %s2034_s30 }
  0x66 PF: > { %v2489_v2 = vld [vmem:[%s2949_s19] sm:$0xff]   ;;  %v2490_v3 = vld [vmem:[%s2949_s19 + $0x8] sm:$0xff]   ;;  %v2744_v4 = vmov 0.0   ;;  %vm2745_vm0 = vmmov 0   ;;  %v2491_v5 = vld [vmem:[%s2949_s19 + $0x10] sm:$0xff]   ;;  %v2746_v6 = vmov 0  }
  0x67   : > { %2320 = vmatprep.subr.bf16.mxu1 %v2744_v4  ;;  %2294 = vmatprep.subr.bf16.mxu0 %v2489_v2  ;;  %v2492_v7 = vld [vmem:[%s2949_s19 + $0x18] sm:$0xff]   ;;  %v581_v8 = vld [vmem:[#allocation2] sm:$0xff]  ;;  %vm710_vm1 = vcmask 130048   ;;  %v2493_v12 = vld [vmem:[%s2949_s19 + $0x20] sm:$0xff]   ;;  %vm1290_vm2 = vcmask 1041409   ;;  %p2188_p4 = scmp.ge.s32.totalorder %s2730_s16, 1 }
  0x68   : > { %2322 = vmatprep.mubr.msk.bf16.mxu1 %vm2745_vm0, %v2744_v4  ;;  %2295 = vmatpush3.bf16.msra.mxu0 %v2489_v2  ;;  %v582_v9 = vld [vmem:[#allocation2 + $0x8] sm:$0xff]  ;;  %v2497_v10 = vld [vmem:[%s3249_s1] sm:$0xff]   ;;  %v2051_v13 = vld [vmem:[%s3250_s2 + $0x10] sm:$0xff] }
  0x69   : > { %2296 = vmatprep.subr.bf16.mxu0 %v2490_v3  ;;  %2487 = vset.pattern.permute.xlu0 %v2746_v6  ;;  %v755_v11 = vld [vmem:[%s3250_s2] sm:$0xff]  ;;  %v756_v14 = vld [vmem:[%s3250_s2 + $0x8] sm:$0xff]  ;;  %v2052_v15 = vld [vmem:[%s3250_s2 + $0x18] sm:$0xff] }
  0x6a   : > { %2488 = vset.pattern.permute.xlu1 %v2746_v6  ;;  %2310 = vmatprep.mubr.bf16.mxu0 %v581_v8  ;;  %v2498_v16 = vld [vmem:[%s2949_s19 + $0x40] sm:$0xff]   ;;  %v2499_v17 = vld [vmem:[%s2949_s19 + $0x48] sm:$0xff]   ;;  %v2500_v19 = vld [vmem:[%s2949_s19 + $0x50] sm:$0xff]  }
  0x6b   : > { %2321 = vmatpush3.bf16.msra.mxu1 %v582_v9  ;;  %759 = vperm.xlu0 %2487, %v755_v11   ;;  %v2494_v18 = vld [vmem:[%s2949_s19 + $0x28] sm:$0xff]   ;;  %v2501_v20 = vld [vmem:[%s2949_s19 + $0x58] sm:$0xff]   ;;  %v2495_v21 = vld [vmem:[%s2949_s19 + $0x30] sm:$0xff]  }
  0x6c   : > { %2297 = vmatpush3.bf16.msra.mxu0 %v2490_v3  ;;  %815 = vperm.xlu1 %2488, %v2051_v13   ;;  %v2502_v22 = vld [vmem:[%s2949_s19 + $0x60] sm:$0xff]   ;;  %v2496_v23 = vld [vmem:[%s2949_s19 + $0x38] sm:$0xff]   ;;  %v2503_v24 = vld [vmem:[%s2949_s19 + $0x68] sm:$0xff]  }
  0x6d   : > { %2298 = vmatprep.subr.bf16.mxu0 %v2491_v5  ;;  %2326 = vmatprep.subr.bf16.mxu1 %v2498_v16  ;;  %v2504_v25 = vld [vmem:[%s2949_s19 + $0x70] sm:$0xff]   ;;  %v2505_v26 = vld [vmem:[%s2949_s19 + $0x78] sm:$0xff]   ;;  %v2514_v27 = vld [vmem:[%s2955_s21 + $0x40] sm:$0xff]  }
  0x6e   : > { %2323 = vmatmul.mubr.msk.bf16.vlgmr.msra.gmra.mrb[0].mxu1 %vm710_vm1, %v2497_v10  ;;  %v2515_v28 = vld [vmem:[%s2955_s21] sm:$0xff]   ;;  %v2516_v29 = vld [vmem:[%s2955_s21 + $0x48] sm:$0xff]   ;;  %v2518_v31 = vld [vmem:[%s2955_s21 + $0x50] sm:$0xff]  }
  0x6f   : > { %764 = vperm.xlu0 %2487, %v756_v14   ;;  %2327 = vmatpush3.bf16.msra.mxu1 %v2498_v16  ;;  %v2517_v30 = vld [vmem:[%s2955_s21 + $0x8] sm:$0xff]   ;;  %v2519_v32 = vld [vmem:[%s2955_s21 + $0x10] sm:$0xff]   ;;  %v2520_v33 = vld [vmem:[%s2955_s21 + $0x58] sm:$0xff]  }
  0x70   : > { %2299 = vmatpush3.bf16.msra.mxu0 %v2491_v5  ;;  %820 = vperm.xlu1 %2488, %v2052_v15   ;;  %v2521_v34 = vld [vmem:[%s2955_s21 + $0x18] sm:$0xff]   ;;  %v2522_v35 = vld [vmem:[%s2955_s21 + $0x60] sm:$0xff]   ;;  %v2524_v37 = vld [vmem:[%s2955_s21 + $0x68] sm:$0xff]  }
  0x71   : > { %2300 = vmatprep.subr.bf16.mxu0 %v2492_v7  ;;  %2328 = vmatprep.subr.bf16.mxu1 %v2499_v17  ;;  %v2523_v36 = vld [vmem:[%s2955_s21 + $0x20] sm:$0xff]   ;;  %v2525_v38 = vld [vmem:[%s2955_s21 + $0x28] sm:$0xff]   ;;  %v2508_v63 = vld [vmem:[%s2949_s19 + $0xd0] sm:$0xff]  }
  0x72   : > { %v2506_v61 = vld [vmem:[%s2949_s19 + $0xc0] sm:$0xff]   ;;  %v2507_v62 = vld [vmem:[%s2949_s19 + $0xc8] sm:$0xff]   ;;  %v2509_v0 = vld [vmem:[%s2949_s19 + $0xd8] sm:$0xff]  }
  0x73   : > { %2329 = vmatpush3.bf16.msra.mxu1 %v2499_v17  ;;  %v1257_v1 = vld [vmem:[%s3251_s3 + $0x1] sm:$0x1]  ;;  %v2510_v2 = vld [vmem:[%s2949_s19 + $0xe0] sm:$0xff]   ;;  %v1256_v5 = vld [vmem:[%s3251_s3] sm:$0x1] }
  0x74   : > { %2301 = vmatpush3.bf16.msra.mxu0 %v2492_v7  ;;  %2330 = vmatprep.subr.bf16.mxu1 %v2500_v19  ;;  %v1259_v3 = vpack.c.bf16 %v1257_v1, %v1257_v1  ;;  %v2511_v6 = vld [vmem:[%s2949_s19 + $0xe8] sm:$0xff]   ;;  %v1258_v7 = vpack.c.bf16 %v1256_v5, %v1256_v5  ;;  %v2526_v15 = vld [vmem:[%s2955_s21 + $0x70] sm:$0xff]   ;;  %v2528_v17 = vld [vmem:[%s2955_s21 + $0x78] sm:$0xff]  }
  0x75   : > { %2302 = vmatprep.subr.bf16.mxu0 %v2493_v12  ;;  %v2527_v16 = vld [vmem:[%s2955_s21 + $0x30] sm:$0xff]  }
  0x77   : > { %2331 = vmatpush3.bf16.msra.mxu1 %v2500_v19 }
  0x78   : > { %2303 = vmatpush3.bf16.msra.mxu0 %v2493_v12  ;;  %2332 = vmatprep.subr.bf16.mxu1 %v2501_v20  ;;  %v2513_v12 = vld [vmem:[%s2949_s19 + $0xf8] sm:$0xff]  }
  0x79   : > { %2304 = vmatprep.subr.bf16.mxu0 %v2494_v18 }
  0x7b   : > { %2333 = vmatpush3.bf16.msra.mxu1 %v2501_v20  ;;  %v2070_v20 = vld [vmem:[%s2974_s13 + $0x1] ss:$0 sm:$0xff] }
  0x7c   : > { %2305 = vmatpush3.bf16.msra.mxu0 %v2494_v18  ;;  %2334 = vmatprep.subr.bf16.mxu1 %v2502_v22  ;;  %v2529_v18 = vld [vmem:[%s2955_s21 + $0x38] sm:$0xff]  }
  0x7d   : > { %2306 = vmatprep.subr.bf16.mxu0 %v2495_v21 }
  0x7f   : > { %2335 = vmatpush3.bf16.msra.mxu1 %v2502_v22  ;;  %v2039_v22 = vld [vmem:[%s2974_s13] ss:$0 sm:$0xff] }
  0x80   : > { %2307 = vmatpush3.bf16.msra.mxu0 %v2495_v21  ;;  %2336 = vmatprep.subr.bf16.mxu1 %v2503_v24 }
  0x81   : > { %2308 = vmatprep.subr.bf16.mxu0 %v2496_v23 }
  0x83   : > { %2337 = vmatpush3.bf16.msra.mxu1 %v2503_v24 }
  0x84   : > { %2309 = vmatpush3.bf16.msra.mxu0 %v2496_v23  ;;  %2338 = vmatprep.subr.bf16.mxu1 %v2504_v25 }
  0x85   : > { %2314 = vmatprep.subr.bf16.mxu0 %v2744_v4 }
  0x87   : > { %2311 = vmatmul.mubr.bf16.vlgmr.msra.gmra.mrb[0].mxu0 %v582_v9  ;;  %2339 = vmatpush3.bf16.msra.mxu1 %v2504_v25  ;;  %v2512_v9 = vld [vmem:[%s2949_s19 + $0xf0] sm:$0xff]  }
  0x88   : > { %2315 = vmatpush3.bf16.msra.mxu0 %v581_v8  ;;  %2316 = vmatprep.mubr.msk.bf16.mxu0 %vm2745_vm0, %v2744_v4  ;;  %v1288_v8 = vunpack.c.l.b16 %v1259_v3 }
  0x89   : > { %2340 = vmatprep.subr.bf16.mxu1 %v2505_v26  ;;  %2238 = vmatprep.subr.bf16.mxu0 %v2514_v27 }
  0x8a   : > { %v1289_v11 = vrot.slane %v1288_v8, 7 }
  0x8b   : > { %2341 = vmatpush3.bf16.msra.mxu1 %v2505_v26 }
  0x8c   : > { %2346 = vmatprep.subr.bf16.mxu1 %v2744_v4 }
  0x8f   : > { %2317 = vmatmul.mubr.msk.bf16.vlgmr.msra.gmra.mrb[4].mxu0 %vm710_vm1, %v2497_v10  ;;  %v1287_v10 = vunpack.c.l.b16 %v1258_v7 }
  0x90   : > { %2239 = vmatpush3.bf16.msra.mxu0 %v2515_v28 }
  0x91   : > { %2240 = vmatprep.subr.bf16.mxu0 %v2516_v29  ;;  %v1291_v13 = vsel %vm1290_vm2, %v1289_v11, %v1287_v10 }
  0x92   : > { %v1292_v14 = vpack.c.b16 %v1291_v13, %v1291_v13 }
  0x94   : > { %2241 = vmatpush3.bf16.msra.mxu0 %v2517_v30 }
  0x95   : > { %2242 = vmatprep.subr.bf16.mxu0 %v2518_v31 }
  0x98   : > { %2243 = vmatpush3.bf16.msra.mxu0 %v2519_v32 }
  0x99   : > { %2244 = vmatprep.subr.bf16.mxu0 %v2520_v33 }
  0x9c   : > { %2245 = vmatpush3.bf16.msra.mxu0 %v2521_v34 }
  0x9d   : > { %2246 = vmatprep.subr.bf16.mxu0 %v2522_v35 }
  0xa0   : > { %2247 = vmatpush3.bf16.msra.mxu0 %v2523_v36 }
  0xa1   : > { %2248 = vmatprep.subr.bf16.mxu0 %v2524_v37 }
  0xa4   : > { %2249 = vmatpush3.bf16.msra.mxu0 %v2525_v38 }
  0xa5   : > { %2250 = vmatprep.subr.bf16.mxu0 %v2526_v15 }
  0xa8   : > { %2251 = vmatpush3.bf16.msra.mxu0 %v2527_v16 }
  0xa9   : > { %2252 = vmatprep.subr.bf16.mxu0 %v2528_v17 }
  0xac   : > { %2253 = vmatpush3.bf16.msra.mxu0 %v2529_v18 }
  0xea   : > { %v760_v52 = vpop.permute.xlu0 %759 }
  0xeb   : > { %v816_v39 = vpop.permute.xlu1 %815 }
  0xee   : > { %v765_v55 = vpop.permute.xlu0 %764 }
  0xef   : > { %v821_v41 = vpop.permute.xlu1 %820 }
 0x141   : > { %v803_v40 = vpop.f32.mrb[0].mxu1 }
 0x142   : > { %v823_v42 = vmul.f32 %v816_v39, %v803_v40  ;;  %v2324_v43 = vpop.f32.mrb[1].mxu1 }
 0x143   : > { %v806_v44 = vpop.f32.mrb[2].mxu1 }
 0x144   : > { %v824_v45 = vmul.f32 %v821_v41, %v806_v44  ;;  %v2325_v46 = vpop.f32.mrb[3].mxu1 }
 0x146   : > { %v826_v47 = vpack.c.bf16 %v824_v45, %v823_v42  ;;  %v2079_v42 = vld [vmem:[%s548_s26] ss:$0 sm:$0xff] }
 0x15a   : > { %v3045_v48 = vpop.f32.mrb[0].mxu0 }
 0x15b   : > { %v3047_v49 = vpop.f32.mrb[1].mxu0  ;;  %v3100_v35 = vadd.f32 %v3045_v48, %v2039_v22 }
 0x15c   : > { %v3049_v50 = vpop.f32.mrb[2].mxu0  ;;  %v3088_v29 = vadd.f32 %v2039_v22, %v3047_v49 }
 0x15d   : > { %v691_v51 = vpop.f32.mrb[3].mxu0  ;;  %v3097_v34 = vadd.f32 %v3049_v50, %v2039_v22 }
 0x15e   : > { %v3083_v24 = vadd.f32 %v2039_v22, %v691_v51 }
 0x15f   : > { %v950_v36 = vpack.c.bf16 %v3097_v34, %v3100_v35 }
 0x160   : > { %v949_v32 = vpack.c.bf16 %v3083_v24, %v3088_v29 }
 0x162   : > { %v748_v53 = vpop.f32.mrb[4].mxu0 }
 0x163   : > { %v2318_v54 = vpop.f32.mrb[5].mxu0  ;;  %v767_v57 = vmul.f32 %v760_v52, %v748_v53 }
 0x164   : > { %v751_v56 = vpop.f32.mrb[6].mxu0 }
 0x165   : > { %v768_v58 = vmul.f32 %v765_v55, %v751_v56  ;;  %v2319_v59 = vpop.f32.mrb[7].mxu0 }
 0x167   : > { %v825_v60 = vpack.c.bf16 %v768_v58, %v767_v57 }
 0x169   : > { %2342 = vmatprep.mubr.bf16.mxu1 %v825_v60 }
 0x16a   : > { %2343 = vmatmul.mubr.bf16.vlgmr.msra.gmra.mrb[4].mxu1 %v826_v47 }
 0x16b   : > { %2347 = vmatpush3.bf16.msra.mxu1 %v2506_v61  ;;  %2362 = vmatprep.mubr.msk.bf16.mxu1 %vm2745_vm0, %v2744_v4 }
 0x16c   : > { %2348 = vmatprep.subr.bf16.mxu1 %v2744_v4 }
 0x16f   : > { %2349 = vmatpush3.bf16.msra.mxu1 %v2507_v62 }
 0x170   : > { %2350 = vmatprep.subr.bf16.mxu1 %v2744_v4 }
 0x173   : > { %2351 = vmatpush3.bf16.msra.mxu1 %v2508_v63 }
 0x174   : > { %2352 = vmatprep.subr.bf16.mxu1 %v2744_v4 }
 0x177   : > { %2353 = vmatpush3.bf16.msra.mxu1 %v2509_v0 }
 0x178   : > { %2354 = vmatprep.subr.bf16.mxu1 %v2744_v4 }
 0x17b   : > { %2355 = vmatpush3.bf16.msra.mxu1 %v2510_v2 }
 0x17c   : > { %2356 = vmatprep.subr.bf16.mxu1 %v2744_v4 }
 0x17f   : > { %2357 = vmatpush3.bf16.msra.mxu1 %v2511_v6 }
 0x180   : > { %2358 = vmatprep.subr.bf16.mxu1 %v2744_v4 }
 0x183   : > { %2359 = vmatpush3.bf16.msra.mxu1 %v2512_v9 }
 0x184   : > { %2360 = vmatprep.subr.bf16.mxu1 %v2744_v4 }
 0x187   : > { %2361 = vmatpush3.bf16.msra.mxu1 %v2513_v12 }
 0x188   : > { %2386 = vmatprep.subr.bf16.mxu1 %v2744_v4 }
 0x18a   : > { %2363 = vmatmul.mubr.bf16.vlgmr.msra.gmra.mrb[8].mxu1 %v1292_v14 }
 0x18b   : > { %2402 = vmatprep.mubr.msk.bf16.mxu1 %vm2745_vm0, %v2744_v4 }
 0x23d   : > { %v2344_v19 = vpop.f32.mrb[4].mxu1 }
 0x23e   : > { %v934_v21 = vpop.f32.mrb[5].mxu1  ;;  %v3090_v30 = vadd.f32 %v2344_v19, %v2070_v20 }
 0x23f   : > { %v2345_v23 = vpop.f32.mrb[6].mxu1  ;;  %v935_v26 = vadd.f32 %v2070_v20, %v934_v21 }
 0x240   : > { %v937_v25 = vpop.f32.mrb[7].mxu1  ;;  %v3085_v27 = vadd.f32 %v2345_v23, %v2070_v20  ;;  %v1163_v16 = vsub.f32 %v3100_v35, %v3090_v30 }
 0x241   : > { %v938_v28 = vadd.f32 %v2070_v20, %v937_v25  ;;  %v1161_v7 = vsub.f32 %v3088_v29, %v935_v26 }
 0x242   : > { %v952_v33 = vpack.c.bf16 %v3085_v27, %v3090_v30  ;;  %v1164_v20 = vsub.f32 %v3097_v34, %v3085_v27 }
 0x243   : > { %v951_v31 = vpack.c.bf16 %v938_v28, %v935_v26  ;;  %v1162_v9 = vsub.f32 %v3083_v24, %v938_v28 }
 0x245   : > { %1120 = vmatprep.mubr.bf16.mxu0 %v951_v31 }
 0x246   : > { %1121 = vmatmul.mubr.bf16.vlgmr.msra.gmra.mrb[8].mxu0 %v949_v32 }
 0x247   : > { %1128 = vmatprep.mubr.bf16.mxu0 %v952_v33 }
 0x24e   : > { %1129 = vmatmul.mubr.bf16.gmra.mrb[12].mxu0 %v950_v36 }
 0x25d   : > { %v3104_v37 = vpop.f32.mrb[8].mxu1 }
 0x25e   : > { %v2364_v38 = vpop.f32.mrb[9].mxu1 }
 0x25f   : > { %v1379_v39 = vpop.f32.mrb[10].mxu1  ;;  %v2530_v38 = vld [vmem:[%s2949_s19 + $0x80] sm:$0xff]  }
 0x260   : > { %v2365_v40 = vpop.f32.mrb[11].mxu1  ;;  %2387 = vmatpush3.bf16.msra.mxu1 %v2530_v38  ;;  %v1199_v39 = vlaneseq }
 0x261   : > { %2388 = vmatprep.subr.bf16.mxu1 %v2744_v4 }
 0x262   : > { %v3122_v40 = vand.u32 127, %v1199_v39 }
 0x264   : > { %vm1201_vm3 = vcmp.lt.s32.totalorder %v3122_v40, 32 }
 0x319   : > { %v2254_v41 = vpop.f32.mrb[8].mxu0 }
 0x31a   : > { %v2255_v43 = vpop.f32.mrb[9].mxu0 }
 0x31b   : > { %v2256_v44 = vadd.f32 %v2255_v43, %v2254_v41  ;;  %v2257_v45 = vpop.f32.mrb[10].mxu0 }
 0x31c   : > { %v2258_v46 = vpop.f32.mrb[11].mxu0 }
 0x31d   : > { %v1123_v47 = vadd.f32 %v2256_v44, %v2079_v42  ;;  %v2259_v48 = vadd.f32 %v2258_v46, %v2257_v45 }
 0x31f   : > { %v2096_v49 = vmul.f32 -1.442695, %v1123_v47  ;;  %v1126_v50 = vadd.f32 %v2259_v48, %v2079_v42 }
 0x321   : > { %2546 = vpow2.f32 %v2096_v49  ;;  %v2097_v51 = vmul.f32 -1.442695, %v1126_v50  ;;  %v2260_v52 = vpop.f32.mrb[12].mxu0 }
 0x322   : > { %v2261_v53 = vpop.f32.mrb[13].mxu0 }
 0x323   : > { %2548 = vpow2.f32 %v2097_v51  ;;  %v2262_v54 = vadd.f32 %v2261_v53, %v2260_v52  ;;  %v2263_v55 = vpop.f32.mrb[14].mxu0 }
 0x324   : > { %v2264_v56 = vpop.f32.mrb[15].mxu0 }
 0x325   : > { %v1131_v57 = vadd.f32 %v2262_v54, %v2079_v42  ;;  %v2265_v58 = vadd.f32 %v2264_v56, %v2263_v55 }
 0x327   : > { %v2098_v59 = vmul.f32 -1.442695, %v1131_v57  ;;  %v1134_v60 = vadd.f32 %v2265_v58, %v2079_v42 }
 0x329   : > { %2550 = vpow2.f32 %v2098_v59  ;;  %v2099_v61 = vmul.f32 -1.442695, %v1134_v60  ;;  %v2531_v59 = vld [vmem:[%s2949_s19 + $0x88] sm:$0xff]   ;;  %v2532_v60 = vld [vmem:[%s2949_s19 + $0x100] sm:$0xff]  }
 0x32a   : > { %2389 = vmatpush3.bf16.msra.mxu1 %v2531_v59  ;;  %2366 = vmatprep.subr.bf16.mxu0 %v2532_v60 }
 0x32b   : > { %v2547_v62 = vpop.eup %2546  ;;  %2552 = vpow2.f32 %v2099_v61  ;;  %2390 = vmatprep.subr.bf16.mxu1 %v2744_v4  ;;  %v2533_v61 = vld [vmem:[%s2949_s19 + $0x90] sm:$0xff]   ;;  %2367 = vmatpush3.bf16.msra.mxu0 %v2532_v60  ;;  %v1625_v60 = vshrl.u32 %v1199_v39, 7 }
 0x32c   : > { %v1149_v63 = vadd.f32 1.0, %v2547_v62  ;;  %v2534_v62 = vld [vmem:[%s2949_s19 + $0x108] sm:$0xff]  }
 0x32d   : > { %v2549_v0 = vpop.eup %2548  ;;  %2368 = vmatprep.subr.bf16.mxu0 %v2534_v62 }
 0x32e   : > { %2554 = vrcp.f32 %v1149_v63  ;;  %v1150_v1 = vadd.f32 1.0, %v2549_v0  ;;  %2391 = vmatpush3.bf16.msra.mxu1 %v2533_v61  ;;  %v2535_v63 = vld [vmem:[%s2949_s19 + $0x98] sm:$0xff]   ;;  %v2536_v0 = vld [vmem:[%s2949_s19 + $0x110] sm:$0xff]  }
 0x32f   : > { %2392 = vmatprep.subr.bf16.mxu1 %v2744_v4  ;;  %2369 = vmatpush3.bf16.msra.mxu0 %v2534_v62 }
 0x330   : > { %2556 = vrcp.f32 %v1150_v1  ;;  %v2537_v1 = vld [vmem:[%s2949_s19 + $0xa0] sm:$0xff]   ;;  %2370 = vmatprep.subr.bf16.mxu0 %v2536_v0 }
 0x332   : > { %2393 = vmatpush3.bf16.msra.mxu1 %v2535_v63 }
 0x333   : > { %v2551_v2 = vpop.eup %2550  ;;  %2394 = vmatprep.subr.bf16.mxu1 %v2744_v4  ;;  %2371 = vmatpush3.bf16.msra.mxu0 %v2536_v0 }
 0x334   : > { %v1151_v3 = vadd.f32 1.0, %v2551_v2  ;;  %v2538_v2 = vld [vmem:[%s2949_s19 + $0x118] sm:$0xff]  }
 0x335   : > { %v2553_v5 = vpop.eup %2552  ;;  %2372 = vmatprep.subr.bf16.mxu0 %v2538_v2 }
 0x336   : > { %2558 = vrcp.f32 %v1151_v3  ;;  %v1152_v6 = vadd.f32 1.0, %v2553_v5  ;;  %2395 = vmatpush3.bf16.msra.mxu1 %v2537_v1  ;;  %v2539_v3 = vld [vmem:[%s2949_s19 + $0xa8] sm:$0xff]   ;;  %v2540_v5 = vld [vmem:[%s2949_s19 + $0x120] sm:$0xff]  }
 0x337   : > { %2396 = vmatprep.subr.bf16.mxu1 %v2744_v4  ;;  %2373 = vmatpush3.bf16.msra.mxu0 %v2538_v2  ;;  %v1645_v2 = vsub.s32 0, %v1625_v60 }
 0x338   : > { %v2555_v8 = vpop.eup %2554  ;;  %2560 = vrcp.f32 %v1152_v6  ;;  %v2119_v6 = vld [vmem:[%s2974_s13 + $0x3] ss:$0 sm:$0xff]  ;;  %2374 = vmatprep.subr.bf16.mxu0 %v2540_v5 }
 0x339   : > { %v1165_v10 = vmul.f32 %v2555_v8, %v1161_v7  ;;  %v2541_v7 = vld [vmem:[%s2949_s19 + $0xb0] sm:$0xff]   ;;  %v3167_v8 = vadd.f32 %v2119_v6, %v3104_v37 }
 0x33a   : > { %v2557_v11 = vpop.eup %2556  ;;  %2397 = vmatpush3.bf16.msra.mxu1 %v2539_v3  ;;  %v2145_v3 = vld [vmem:[%s2974_s13 + $0x4] ss:$0 sm:$0xff] }
 0x33b   : > { %v1169_v12 = vadd.f32 %v1165_v10, %v935_v26  ;;  %v1166_v13 = vmul.f32 %v2557_v11, %v1162_v9  ;;  %2398 = vmatprep.subr.bf16.mxu1 %v2744_v4  ;;  %2375 = vmatpush3.bf16.msra.mxu0 %v2540_v5  ;;  %v2542_v9 = vld [vmem:[%s2949_s19 + $0x128] sm:$0xff]   ;;  %v2543_v10 = vld [vmem:[%s2949_s19 + $0xb8] sm:$0xff]   ;;  %v1506_v11 = vpack.c.bf16 %v3167_v8, %v3167_v8 }
 0x33c   : > { %2376 = vmatprep.subr.bf16.mxu0 %v2542_v9 }
 0x33d   : > { %v1173_v14 = vmax.f32 %v1169_v12, 0.0  ;;  %v1170_v15 = vadd.f32 %v1166_v13, %v938_v28  ;;  %v2545_v13 = vld [vmem:[%s2949_s19 + $0x138] sm:$0xff]  }
 0x33e   : > { %2399 = vmatpush3.bf16.msra.mxu1 %v2541_v7 }
 0x33f   : > { %v1177_v17 = vadd.f32 %v1173_v14, %v1169_v12  ;;  %v1174_v18 = vmax.f32 %v1170_v15, 0.0  ;;  %2400 = vmatprep.subr.bf16.mxu1 %v2744_v4  ;;  %2377 = vmatpush3.bf16.msra.mxu0 %v2542_v9  ;;  %v2544_v12 = vld [vmem:[%s2949_s19 + $0x130] sm:$0xff]  }
 0x340   : > { %v2559_v19 = vpop.eup %2558  ;;  %2378 = vmatprep.subr.bf16.mxu0 %v2544_v12 }
 0x341   : > { %1183 = vadd.xlane.f32.xlu0 %v1177_v17  ;;  %v1178_v21 = vadd.f32 %v1174_v18, %v1170_v15  ;;  %v1167_v22 = vmul.f32 %v2559_v19, %v1163_v16 }
 0x342   : > { %v2561_v23 = vpop.eup %2560  ;;  %2401 = vmatpush3.bf16.msra.mxu1 %v2543_v10 }
 0x343   : > { %1185 = vadd.xlane.f32.xlu1 %v1178_v21  ;;  %v1171_v25 = vadd.f32 %v1167_v22, %v3090_v30  ;;  %v1168_v26 = vmul.f32 %v2561_v23, %v1164_v20  ;;  %2379 = vmatpush3.bf16.msra.mxu0 %v2544_v12 }
 0x344   : > { %2380 = vmatprep.subr.bf16.mxu0 %v2545_v13 }
 0x345   : > { %v1175_v31 = vmax.f32 %v1171_v25, 0.0  ;;  %v1172_v28 = vadd.f32 %v1168_v26, %v3085_v27  ;;  %2403 = vmatmul.mubr.bf16.vlgmr.msra.gmra.mrb[12].mxu1 %v1506_v11  ;;  %v2100_v26 = vld [vmem:[%s2979_s27] ss:$0 sm:$0xff] }
 0x347   : > { %v1179_v32 = vadd.f32 %v1175_v31, %v1171_v25  ;;  %v1176_v33 = vmax.f32 %v1172_v28, 0.0  ;;  %2381 = vmatpush3.bf16.msra.mxu0 %v2545_v13 }
 0x349   : > { %1187 = vadd.xlane.f32.xlu0 %v1179_v32  ;;  %v1180_v36 = vadd.f32 %v1176_v33, %v1172_v28 }
 0x34d   : > { %1189 = vadd.xlane.f32.xlu0 %v1180_v36 }
 0x3ce   : > { %v1184_v41 = vpop.xlane.xlu0 %1183 }
 0x3cf   : > { %v1191_v42 = vmul.f32 0.03125, %v1184_v41 }
 0x3d0   : > { %v1186_v30 = vpop.xlane.xlu1 %1185 }
 0x3d1   : > { %v1195_v43 = vsub.f32 %v1177_v17, %v1191_v42  ;;  %v1192_v27 = vmul.f32 0.03125, %v1186_v30 }
 0x3d3   : > { %v1196_v44 = vsub.f32 %v1178_v21, %v1192_v27  ;;  %v3127_v45 = vsel %vm1201_vm3, %v1195_v43, 0.0 }
 0x3d4   : > { %v1208_v46 = vmul.f32 %v3127_v45, %v3127_v45 }
 0x3d5   : > { %v3133_v47 = vsel %vm1201_vm3, %v1196_v44, 0.0 }
 0x3d6   : > { %1212 = vadd.xlane.f32.xlu1 %v1208_v46  ;;  %v1188_v48 = vpop.xlane.xlu0 %1187  ;;  %v1209_v49 = vmul.f32 %v3133_v47, %v3133_v47 }
 0x3d7   : > { %v1193_v50 = vmul.f32 0.03125, %v1188_v48 }
 0x3d8   : > { %1214 = vadd.xlane.f32.xlu0 %v1209_v49 }
 0x3d9   : > { %v1197_v51 = vsub.f32 %v1179_v32, %v1193_v50 }
 0x3da   : > { %v1190_v52 = vpop.xlane.xlu0 %1189 }
 0x3db   : > { %v1194_v53 = vmul.f32 0.03125, %v1190_v52  ;;  %v3139_v54 = vsel %vm1201_vm3, %v1197_v51, 0.0 }
 0x3dc   : > { %v1210_v55 = vmul.f32 %v3139_v54, %v3139_v54 }
 0x3dd   : > { %v1198_v56 = vsub.f32 %v1180_v36, %v1194_v53  ;;  %v2101_v36 = vld [vmem:[%s2984_s6] ss:$0 sm:$0xff] }
 0x3de   : > { %1216 = vadd.xlane.f32.xlu1 %v1210_v55 }
 0x3df   : > { %v3145_v57 = vsel %vm1201_vm3, %v1198_v56, 0.0  ;;  %v2747_v56 = vmov 1966171168  }
 0x3e0   : > { %v1211_v58 = vmul.f32 %v3145_v57, %v3145_v57 }
 0x3e2   : > { %1218 = vadd.xlane.f32.xlu0 %v1211_v58  ;;  %v1622_v58 = vunpack.c.l.s4 %v2747_v56 }
 0x3e4   : > { %v1623_v59 = vunpack.c.0.s8 %v1622_v58 }
 0x3e6   : > { %v1626_v62 = vsub.s32 %v1623_v59, %v1625_v60 }
 0x463   : > { %v1213_v14 = vpop.xlane.xlu1 %1212 }
 0x464   : > { %v1220_v37 = vmul.f32 0.03125, %v1213_v14 }
 0x465   : > { %v1215_v15 = vpop.xlane.xlu0 %1214 }
 0x466   : > { %v1224_v16 = vadd.f32 1e-05, %v1220_v37  ;;  %v1221_v4 = vmul.f32 0.03125, %v1215_v15 }
 0x468   : > { %2562 = vrsqrt.f32 %v1224_v16  ;;  %v1225_v17 = vadd.f32 1e-05, %v1221_v4 }
 0x46a   : > { %2564 = vrsqrt.f32 %v1225_v17 }
 0x46b   : > { %v1217_v18 = vpop.xlane.xlu1 %1216 }
 0x46c   : > { %v1222_v19 = vmul.f32 0.03125, %v1217_v18 }
 0x46e   : > { %v1226_v20 = vadd.f32 1e-05, %v1222_v19 }
 0x46f   : > { %v1219_v21 = vpop.xlane.xlu0 %1218 }
 0x470   : > { %2566 = vrsqrt.f32 %v1226_v20  ;;  %v1223_v22 = vmul.f32 0.03125, %v1219_v21  ;;  %v1688_v21 = vrot.slane %v3167_v8, %v1626_v62 }
 0x472   : > { %v2563_v23 = vpop.eup %2562  ;;  %v1227_v25 = vadd.f32 1e-05, %v1223_v22 }
 0x473   : > { %v1232_v31 = vmul.f32 %v2563_v23, %v3127_v45  ;;  %v1689_v23 = vcombine.high %v1688_v21, %v1688_v21 }
 0x474   : > { %v2565_v28 = vpop.eup %2564  ;;  %2568 = vrsqrt.f32 %v1227_v25 }
 0x475   : > { %v1233_v32 = vmul.f32 %v2565_v28, %v3133_v47  ;;  %v1242_v33 = vmul.f32 %v2100_v26, %v1232_v31  ;;  %v1614_v47 = vpop.f32.mrb[12].mxu1 }
 0x476   : > { %v2404_v52 = vpop.f32.mrb[13].mxu1 }
 0x477   : > { %v1243_v38 = vmul.f32 %v2100_v26, %v1233_v32  ;;  %v1252_v41 = vadd.f32 %v2101_v36, %v1242_v33  ;;  %v1617_v53 = vpop.f32.mrb[14].mxu1 }
 0x478   : > { %v2405_v55 = vpop.f32.mrb[15].mxu1 }
 0x479   : > { %v1253_v42 = vadd.f32 %v2101_v36, %v1243_v38 }
 0x47a   : > { %v2567_v30 = vpop.eup %2566 }
 0x47b   : > { %v1234_v43 = vmul.f32 %v2567_v30, %v3139_v54  ;;  %v1382_v27 = vpack.c.bf16 %v1253_v42, %v1252_v41  ;;  %v2171_v54 = vld [vmem:[%s2974_s13 + $0x2] ss:$0 sm:$0xff]  ;;  %v1696_v41 = vrot.slane %v1688_v21, %v1626_v62 }
 0x47c   : > { %v1615_v61 = vadd.f32 %v2171_v54, %v1614_v47 }
 0x47d   : > { %2382 = vmatprep.mubr.bf16.mxu0 %v1382_v27  ;;  %v1244_v48 = vmul.f32 %v2100_v26, %v1234_v43  ;;  %v1707_v30 = vrot.slane %v1696_v41, %v1645_v2 }
 0x47e   : > { %v2569_v44 = vpop.eup %2568 }
 0x47f   : > { %v1235_v46 = vmul.f32 %v2569_v44, %v3145_v57  ;;  %v1254_v49 = vadd.f32 %v2101_v36, %v1244_v48  ;;  %v1627_v57 = vrot.slane %v1615_v61, %v1626_v62  ;;  %v1714_v27 = vsub.f32 %v3088_v29, %v1707_v30 }
 0x481   : > { %v1245_v45 = vmul.f32 %v2100_v26, %v1235_v46  ;;  %v1628_v63 = vcombine.high %v1627_v57, %v1627_v57  ;;  %v1635_v1 = vrot.slane %v1627_v57, %v1626_v62 }
 0x483   : > { %v1255_v50 = vadd.f32 %v2101_v36, %v1245_v45  ;;  %v1642_v0 = vrot.slane %v1628_v63, %v1626_v62  ;;  %v1646_v7 = vrot.slane %v1635_v1, %v1645_v2  ;;  %v1703_v36 = vrot.slane %v1689_v23, %v1626_v62 }
 0x485   : > { %v1383_v51 = vpack.c.bf16 %v1255_v50, %v1254_v49  ;;  %v1650_v5 = vrot.slane %v1642_v0, %v1645_v2  ;;  %v1711_v42 = vrot.slane %v1703_v36, %v1645_v2  ;;  %v1715_v50 = vsub.f32 %v3083_v24, %v1707_v30 }
 0x487   : > { %2383 = vmatmul.mubr.bf16.vlgmr.msra.gmra.mrb[16].mxu0 %v1383_v51  ;;  %v1716_v43 = vsub.f32 %v3100_v35, %v1711_v42  ;;  %v1717_v48 = vsub.f32 %v3097_v34, %v1711_v42 }
 0x55a   : > { %v2384_v6 = vpop.f32.mrb[16].mxu0 }
 0x55b   : > { %v1500_v9 = vadd.f32 %v2384_v6, %v2145_v3  ;;  %v1491_v10 = vpop.f32.mrb[17].mxu0 }
 0x55c   : > { %v1492_v11 = vadd.f32 %v2145_v3, %v1491_v10  ;;  %v2385_v12 = vpop.f32.mrb[18].mxu0 }
 0x55d   : > { %v1655_v13 = vadd.f32 %v1650_v5, %v1500_v9  ;;  %v1503_v14 = vadd.f32 %v2385_v12, %v2145_v3  ;;  %v1494_v37 = vpop.f32.mrb[19].mxu0 }
 0x55e   : > { %v1653_v15 = vadd.f32 %v1646_v7, %v1492_v11  ;;  %v1495_v39 = vadd.f32 %v2145_v3, %v1494_v37 }
 0x55f   : > { %v2182_v16 = vmul.f32 -1.442695, %v1655_v13  ;;  %v1656_v4 = vadd.f32 %v1650_v5, %v1503_v14 }
 0x560   : > { %v2180_v17 = vmul.f32 -1.442695, %v1653_v15  ;;  %v1654_v18 = vadd.f32 %v1646_v7, %v1495_v39 }
 0x561   : > { %2570 = vpow2.f32 %v2182_v16  ;;  %v2183_v19 = vmul.f32 -1.442695, %v1656_v4 }
 0x562   : > { %2572 = vpow2.f32 %v2180_v17  ;;  %v2181_v20 = vmul.f32 -1.442695, %v1654_v18 }
 0x563   : > { %2574 = vpow2.f32 %v2183_v19 }
 0x564   : > { %2576 = vpow2.f32 %v2181_v20 }
 0x56b   : > { %v2571_v22 = vpop.eup %2570 }
 0x56c   : > { %v2573_v25 = vpop.eup %2572  ;;  %v1671_v26 = vadd.f32 1.0, %v2571_v22 }
 0x56d   : > { %v2575_v31 = vpop.eup %2574  ;;  %v1669_v28 = vadd.f32 1.0, %v2573_v25 }
 0x56e   : > { %v2577_v32 = vpop.eup %2576  ;;  %2578 = vrcp.f32 %v1671_v26  ;;  %v1672_v33 = vadd.f32 1.0, %v2575_v31 }
 0x56f   : > { %2580 = vrcp.f32 %v1669_v28  ;;  %v1670_v38 = vadd.f32 1.0, %v2577_v32  ;;  %v2186_v32 = vld [vmem:[%s2979_s27 + $0x1] ss:$0 sm:$0xff] }
 0x570   : > { %2582 = vrcp.f32 %v1672_v33 }
 0x571   : > { %2584 = vrcp.f32 %v1670_v38  ;;  %v2187_v38 = vld [vmem:[%s2984_s6 + $0x1] ss:$0 sm:$0xff] }
 0x578   : > { %v2579_v8 = vpop.eup %2578 }
 0x579   : > { %v2581_v44 = vpop.eup %2580  ;;  %v1720_v46 = vmul.f32 %v2579_v8, %v1716_v43 }
 0x57a   : > { %v2583_v45 = vpop.eup %2582  ;;  %v1718_v49 = vmul.f32 %v2581_v44, %v1714_v27 }
 0x57b   : > { %v2585_v51 = vpop.eup %2584  ;;  %v1724_v47 = vadd.f32 %v1720_v46, %v1711_v42  ;;  %v1721_v52 = vmul.f32 %v2583_v45, %v1717_v48 }
 0x57c   : > { %v1722_v53 = vadd.f32 %v1718_v49, %v1707_v30  ;;  %v1719_v55 = vmul.f32 %v2585_v51, %v1715_v50 }
 0x57d   : > { %v1725_v56 = vadd.f32 %v1721_v52, %v1711_v42  ;;  %v1728_v60 = vmax.f32 %v1724_v47, 0.0 }
 0x57e   : > { %v1726_v58 = vmax.f32 %v1722_v53, 0.0  ;;  %v1723_v54 = vadd.f32 %v1719_v55, %v1707_v30 }
 0x57f   : > { %v1729_v61 = vmax.f32 %v1725_v56, 0.0  ;;  %v1732_v34 = vadd.f32 %v1728_v60, %v1724_v47 }
 0x580   : > { %v1730_v35 = vadd.f32 %v1726_v58, %v1722_v53  ;;  %v1727_v59 = vmax.f32 %v1723_v54, 0.0 }
 0x581   : > { %v1733_v62 = vadd.f32 %v1729_v61, %v1725_v56 }
 0x582   : > { %1738 = vadd.xlane.f32.xlu1 %v1730_v35  ;;  %v1731_v29 = vadd.f32 %v1727_v59, %v1723_v54 }
 0x584   : > { %1740 = vadd.xlane.f32.xlu0 %v1731_v29 }
 0x586   : > { %1742 = vadd.xlane.f32.xlu1 %v1732_v34 }
 0x588   : > { %1744 = vadd.xlane.f32.xlu0 %v1733_v62 }
 0x60f   : > { %v1739_v24 = vpop.xlane.xlu1 %1738 }
 0x610   : > { %v1746_v57 = vmul.f32 0.03125, %v1739_v24 }
 0x611   : > { %v1741_v63 = vpop.xlane.xlu0 %1740 }
 0x612   : > { %v1750_v0 = vsub.f32 %v1730_v35, %v1746_v57  ;;  %v1747_v1 = vmul.f32 0.03125, %v1741_v63 }
 0x613   : > { %v1743_v2 = vpop.xlane.xlu1 %1742 }
 0x614   : > { %v1751_v3 = vsub.f32 %v1731_v29, %v1747_v1  ;;  %v1748_v5 = vmul.f32 0.03125, %v1743_v2  ;;  %v1754_v6 = vsel %vm1201_vm3, %v1750_v0, 0.0 }
 0x615   : > { %v1745_v7 = vpop.xlane.xlu0 %1744  ;;  %v1758_v9 = vmul.f32 %v1754_v6, %v1754_v6 }
 0x616   : > { %v1752_v10 = vsub.f32 %v1732_v34, %v1748_v5  ;;  %v1749_v11 = vmul.f32 0.03125, %v1745_v7  ;;  %v1755_v12 = vsel %vm1201_vm3, %v1751_v3, 0.0 }
 0x617   : > { %1762 = vadd.xlane.f32.xlu1 %v1758_v9  ;;  %v1759_v13 = vmul.f32 %v1755_v12, %v1755_v12 }
 0x618   : > { %v1753_v14 = vsub.f32 %v1733_v62, %v1749_v11  ;;  %v1756_v37 = vsel %vm1201_vm3, %v1752_v10, 0.0 }
 0x619   : > { %1764 = vadd.xlane.f32.xlu0 %v1759_v13  ;;  %v1760_v15 = vmul.f32 %v1756_v37, %v1756_v37 }
 0x61a   : > { %v1757_v39 = vsel %vm1201_vm3, %v1753_v14, 0.0 }
 0x61b   : > { %1766 = vadd.xlane.f32.xlu1 %v1760_v15  ;;  %v1761_v16 = vmul.f32 %v1757_v39, %v1757_v39 }
 0x61d   : > { %1768 = vadd.xlane.f32.xlu0 %v1761_v16 }
 0x6a4   : > { %v1763_v4 = vpop.xlane.xlu1 %1762 }
 0x6a5   : > { %v1770_v17 = vmul.f32 0.03125, %v1763_v4 }
 0x6a6   : > { %v1765_v18 = vpop.xlane.xlu0 %1764 }
 0x6a7   : > { %v1774_v19 = vadd.f32 1e-05, %v1770_v17  ;;  %v1771_v20 = vmul.f32 0.03125, %v1765_v18 }
 0x6a8   : > { %v1767_v21 = vpop.xlane.xlu1 %1766 }
 0x6a9   : > { %2586 = vrsqrt.f32 %v1774_v19  ;;  %v1775_v22 = vadd.f32 1e-05, %v1771_v20  ;;  %v1772_v23 = vmul.f32 0.03125, %v1767_v21 }
 0x6aa   : > { %v1769_v25 = vpop.xlane.xlu0 %1768 }
 0x6ab   : > { %2588 = vrsqrt.f32 %v1775_v22  ;;  %v1776_v26 = vadd.f32 1e-05, %v1772_v23  ;;  %v1773_v31 = vmul.f32 0.03125, %v1769_v25 }
 0x6ad   : > { %2590 = vrsqrt.f32 %v1776_v26  ;;  %v1777_v40 = vadd.f32 1e-05, %v1773_v31 }
 0x6af   : > { %2592 = vrsqrt.f32 %v1777_v40 }
 0x6b3   : > { %v2587_v28 = vpop.eup %2586 }
 0x6b4   : > { %v1782_v33 = vmul.f32 %v2587_v28, %v1754_v6 }
 0x6b5   : > { %v2589_v36 = vpop.eup %2588 }
 0x6b6   : > { %v1792_v41 = vmul.f32 %v2186_v32, %v1782_v33  ;;  %v1783_v42 = vmul.f32 %v2589_v36, %v1755_v12 }
 0x6b7   : > { %v2591_v30 = vpop.eup %2590 }
 0x6b8   : > { %v1802_v43 = vadd.f32 %v2187_v38, %v1792_v41  ;;  %v1793_v8 = vmul.f32 %v2186_v32, %v1783_v42  ;;  %v1784_v27 = vmul.f32 %v2591_v30, %v1756_v37  ;;  %1809 = sbr.rel (%p2188_p4) target bundleno = 1731 (0x6c3), region = 76 }
 0x6b9   : > { %v2593_v44 = vpop.eup %2592 }
 0x6ba   : > { %v1803_v46 = vadd.f32 %v2187_v38, %v1793_v8  ;;  %v1794_v48 = vmul.f32 %v2186_v32, %v1784_v27  ;;  %v1785_v45 = vmul.f32 %v2593_v44, %v1757_v39 }
 0x6bc   : > { %v1804_v49 = vadd.f32 %v2187_v38, %v1794_v48  ;;  %v1795_v50 = vmul.f32 %v2186_v32, %v1785_v45  ;;  %v1810_v47 = vpack.c.bf16 (!%p2188_p4), %v1803_v46, %v1802_v43 }
 0x6be   : > { %v1805_v51 = vadd.f32 %v2187_v38, %v1795_v50  ;;  %1812 = vst [vmem:[#allocation2] sm:$0xff] (!%p2188_p4), %v1810_v47 }
 0x6c0   : > { %v1811_v52 = vpack.c.bf16 %v1805_v51, %v1804_v49 }
 0x6c2   : > { %1813 = vst [vmem:[#allocation2 + $0x8] sm:$0xff] %v1811_v52 }
 0x6c3 PF: > { %p2189_p8 = scmp.ne.s32.totalorder %s2730_s16, 1 }
 0x6c4   : > { %v2206_v53 = vpack.c.bf16 (!%p2189_p8), %v1803_v46, %v1802_v43  ;;  %v2211_v55 = vpack.c.bf16 (!%p2189_p8), %v1805_v51, %v1804_v49 }
 0x6c5   : > { %1817 = sbr.rel (%p2189_p8) target bundleno = 1740 (0x6cc), region = 80 }
 0x6c6   : > { %2207 = vst [vmem:[#allocation8] sm:$0xff] (!%p2189_p8), %v2206_v53   ;;  %2213 = vst [vmem:[#allocation8 + $0x8] sm:$0xff] (!%p2189_p8), %v2211_v55  }
 0x6cc PF: > { %s3272_s6 = sadd.s32 4294967295, %s2738_s18   ;;  %s2748_s24 = smov [#allocation8]  }
 0x6cd   : > { %p3204_p1 = scmp.eq.s32.totalorder %s3272_s6, 1  ;;  %s1848_s26 = sshll.u32 %s2748_s24, 4  ;;  %s1849_s26 = int_to_ptr.vmem [resolvable:$true] %s1848_s26 }
 0x6ce   : > { %s2654_s13 = scalar_lea.vmem %s1849_s26, 256  ;;  %p2661_p5 = scmp.lt.s32.totalorder %s1849_s26, %s1849_s26 }
 0x6cf   : > { %p2655_p2 = scmp.ne.s32.totalorder %s1849_s26, %s2654_s13  ;;  %p2662_p6 = scmp.lt.s32.totalorder %s2654_s13, %s2654_s13 }
 0x6d1   : > { %p2656_p13 = pnand %p2655_p2, %p3204_p1  ;;  %p2663_p10 = por %p2662_p6, %p2661_p5 }
 0x6d3   : > { %p2657_p3 = pneg %p2656_p13 }
 0x6d5   : > { %p2664_p12 = pnand %p2663_p10, %p2657_p3 }
 0x6d7   : > { %2667 = shalt.err (!%p2664_p12)
}
 0x6d8   : > { %s2668_s11 = scalar_lea.hbm %s3258_s10, 256 }
 0x6d9   : > { %p2669_p0 = scmp.ne.s32.totalorder %s3258_s10, %s2668_s11  ;;  %p2674_p11 = scmp.lt.u32.totalorder %s2668_s11, %s3258_s10 }
 0x6db   : > { %p2670_p7 = pnand %p2669_p0, %p3204_p1 }
 0x6dd   : > { %p2671_p9 = pneg %p2670_p7 }
 0x6df   : > { %p2676_p4 = pnand %p2674_p11, %p2671_p9 }
 0x6e1   : > { %2679 = shalt.err (!%p2676_p4)
}
 0x6e2   : > { %s2749_s30 = smov 64   ;;  %s2750_s4 = smov 4  }
 0x6e3   : > { %2415 = dma.vmem_to_hbm [thread:$0]  (%p3204_p1), %s1849_s26, 256, %s3258_s10, [#allocation5], %s2749_s30, %s2749_s30, %s2750_s4  }
 0x6e4   : > { %2713 = dma.done.wait (%p3204_p1), [#allocation5], 256  }
 0x6e5   : > { %2715 = vsyncadd (%p3204_p1), [#allocation5], 4294967040 }
 0x6e6 PF: > { %s27_s18 = sadd.s32 1, %s2738_s18   ;;  %s3274_s21 = sld [smem:[#allocation13_spill]] }
 0x6e7   : > { %p24_p8 = scmp.ge.s32.totalorder %s27_s18, 4   ;;  %s3275_s25 = sld [smem:[#allocation12_spill]] }
 0x6e8   : > { %s3276_s13 = smov %s2722_s14  ;;  %s3277_s14 = smov %s2726_s15 }
 0x6e9   : > { %s3279_s16 = smov %s2734_s17  ;;  %26 = sbr.rel (!%p24_p8) target bundleno = 10 (0xa), region = 155 }
 0x6ec   : > { %s3278_s15 = smov %s3274_s21 }
 0x6ed   : > { %s3280_s17 = smov %s3275_s25 }
 0x6f0   :  { %1864 = vsyncpa [#allocation4], 1 }
 0x6f1   :  { %1866 = vsyncpa [#allocation4 + $0x1], 1 }
 0x6f2   :  { %1867 = vsyncpa [#allocation7], 1 }
 0x6f3   :  { %1869 = vsyncpa [#allocation7 + $0x1], 1 }
 0x6f4   :  { %1870 = vsyncpa [#allocation5], 1 }
 0x6f5   :  { %1872 = vsyncpa [#allocation5 + $0x1], 1 }

</bundles_post_ra>
